<compile_context>
chip_gen: v6e
topology: v6e:2x2x1
jax: 0.10.0
libtpu: 0.0.40
codegen_flags: <defaults>
</compile_context>

<pallas_src>
import functools

import jax
import jax.numpy as jnp
from jax import lax
from jax.experimental import pallas as pl
from jax.experimental.pallas import tpu as pltpu


_SQRT_HALF = 0.7071067811865476   # 1/sqrt(2) for exact (erf) GELU
_LN_EPS = 1e-5                    # PyTorch LayerNorm default


# ---------------------------------------------------------------------------
# small helpers
# ---------------------------------------------------------------------------
def _round_up(x, m):
    return ((x + m - 1) // m) * m


def _pad2d(a, rows, cols):
    return jnp.pad(a, ((0, rows - a.shape[0]), (0, cols - a.shape[1])))


def _pad_row(v, cols):
    return jnp.pad(v.reshape(1, -1), ((0, 0), (0, cols - v.shape[0])))


def _const_spec(arr):
    """BlockSpec for a grid-invariant (resident) operand.

    Single-buffered (pl.Buffered(1)): resident weights cost one VMEM copy
    instead of two — matters for v7x's 64 MiB VMEM in the dual-head kernel.
    Falls back to the default double-buffered spec if this jax version
    rejects the pipeline_mode kwarg.
    """
    idx = lambda *_: (0, 0)
    try:
        return pl.BlockSpec(arr.shape, idx, pipeline_mode=pl.Buffered(1))
    except Exception:            # pragma: no cover - older jax w/o pipeline_mode
        return pl.BlockSpec(arr.shape, idx)


def _pick_batch_tile(B, batch_tile):
    # tb is the w1-reuse factor (w1 K tiles are re-streamed from HBM once per
    # batch tile).  Default 512 is a reasonable middle ground
    # (knee ~256 v5e, ~640-768 v6e, ~320 v7x) — sweep per generation.
    cap = 512 if batch_tile is None else int(batch_tile)
    tb = min(cap, _round_up(B, 256))     # >=256 rows keeps MXU rows full
    return max(8, _round_up(tb, 8))


def _pick_k_tile(e, k_tile):
    """K tile: multiple of 128, <= k_tile, minimizing padded-E waste."""
    k_tile = max(128, (int(k_tile) // 128) * 128)
    e128 = _round_up(e, 128)
    if e128 <= k_tile:
        return e128
    best_tk, best_pad = k_tile, _round_up(e128, k_tile)
    for cand in range(k_tile, max(k_tile // 2, 128) - 1, -128):
        pad = _round_up(e128, cand)
        if pad < best_pad:
            best_tk, best_pad = cand, pad
    return best_tk


def _row_chunk(tb):
    # 128-row epilogue chunks bound f32 intermediates (spill control).
    return 128 if (tb >= 128 and tb % 128 == 0) else tb


def _vmem_limit(buffer_bytes):
    # Explicit scoped-VMEM request: real buffer footprint + headroom, with a
    # 32 MiB floor (v5e default is only 16 MiB) and a sane cap.
    need = int(buffer_bytes * 3 // 2) + (4 << 20)
    return int(min(max(need, 32 << 20), 100 << 20))


# ---------------------------------------------------------------------------
# In-kernel epilogue shared by all kernels:
#   erf-GELU -> fc (bf16 matmul, f32 acc) -> residual -> LayerNorm
# Operates on an f32 (rows, p_pad) block.  Padded lanes (>= p_actual) carry
# zeros in proj / weights / biases / gamma / beta, so lane sums equal sums
# over the real lanes; the LayerNorm statistics use 1/p_actual with a lane
# mask (two-pass variance) and padded output lanes come out exactly zero.
# ---------------------------------------------------------------------------
def _head_epilogue(proj, w2_ref, b2_ref, gamma_ref, beta_ref, p_actual, p_pad):
    # exact GELU (PyTorch nn.GELU default, erf based), f32
    g = 0.5 * proj * (1.0 + lax.erf(proj * jnp.float32(_SQRT_HALF)))
    # fc: bf16 MXU matmul, f32 accumulation
    h = jnp.dot(g.astype(jnp.bfloat16), w2_ref[...],
                preferred_element_type=jnp.float32)
    h = h + b2_ref[...].astype(jnp.float32) + proj
    # two-pass LayerNorm over the real lanes (avoids E[h^2]-mean^2 cancellation)
    inv_p = jnp.float32(1.0 / p_actual)
    mean = jnp.sum(h, axis=-1, keepdims=True) * inv_p
    d = h - mean
    if p_pad != p_actual:
        lane = lax.broadcasted_iota(jnp.int32, d.shape, d.ndim - 1)
        d = jnp.where(lane < p_actual, d, 0.0)
    var = jnp.sum(d * d, axis=-1, keepdims=True) * inv_p
    y = d * lax.rsqrt(var + jnp.float32(_LN_EPS))
    return (y * gamma_ref[...].astype(jnp.float32)
            + beta_ref[...].astype(jnp.float32))


# ---------------------------------------------------------------------------
# Pallas kernels — single Projection_Head
# ---------------------------------------------------------------------------
def _projection_head_kernel(x_ref, w1_ref, b1_ref, w2_ref, b2_ref,
                            gamma_ref, beta_ref, o_ref, acc_ref,
                            *, p_actual, p_pad, chunk):
    """One Projection_Head, K-tiled over the (gene) input-feature axis."""
    k = pl.program_id(1)

    @pl.when(k == 0)
    def _():
        acc_ref[...] = jnp.zeros_like(acc_ref)

    # projector: bf16 MXU matmul, f32 accumulation across K tiles
    acc_ref[...] += jnp.dot(x_ref[...].astype(jnp.bfloat16), w1_ref[...],
                            preferred_element_type=jnp.float32)

    @pl.when(k == pl.num_programs(1) - 1)
    def _():
        tb = o_ref.shape[0]
        # epilogue in row chunks -> bounded f32 working set (spill control)
        for r in range(0, tb, chunk):
            proj = acc_ref[pl.ds(r, chunk), :] + b1_ref[...].astype(jnp.float32)
            y = _head_epilogue(proj, w2_ref, b2_ref, gamma_ref, beta_ref,
                               p_actual, p_pad)
            o_ref[pl.ds(r, chunk), :] = y.astype(o_ref.dtype)


def _projection_head_kernel_1k(x_ref, w1_ref, b1_ref, w2_ref, b2_ref,
                               gamma_ref, beta_ref, o_ref,
                               *, p_actual, p_pad, chunk):
    """Single-K-step Projection_Head (E fits one K tile): no accumulator RMW."""
    tb = o_ref.shape[0]
    for r in range(0, tb, chunk):
        proj = jnp.dot(x_ref[pl.ds(r, chunk), :].astype(jnp.bfloat16),
                       w1_ref[...], preferred_element_type=jnp.float32)
        proj = proj + b1_ref[...].astype(jnp.float32)
        y = _head_epilogue(proj, w2_ref, b2_ref, gamma_ref, beta_ref,
                           p_actual, p_pad)
        o_ref[pl.ds(r, chunk), :] = y.astype(o_ref.dtype)


# ---------------------------------------------------------------------------
# Pallas kernels — fused model head + projection head (retrieval_parallel)
# ---------------------------------------------------------------------------
def _dual_rows(r, chunk, proj1,
               w2a_ref, b2a_ref, ga_ref, bta_ref,
               w1b_ref, b1b_ref, w2b_ref, b2b_ref, gb_ref, btb_ref,
               o1_ref, o2_ref, p1_actual, p1_pad, p2_actual, p2_pad):
    """Per row-chunk: head-A epilogue, then head-B straight from VMEM."""
    y1 = _head_epilogue(proj1, w2a_ref, b2a_ref, ga_ref, bta_ref,
                        p1_actual, p1_pad)
    o1_ref[pl.ds(r, chunk), :] = y1.astype(o1_ref.dtype)
    proj2 = jnp.dot(y1.astype(jnp.bfloat16), w1b_ref[...],
                    preferred_element_type=jnp.float32)
    proj2 = proj2 + b1b_ref[...].astype(jnp.float32)
    y2 = _head_epilogue(proj2, w2b_ref, b2b_ref, gb_ref, btb_ref,
                        p2_actual, p2_pad)
    o2_ref[pl.ds(r, chunk), :] = y2.astype(o2_ref.dtype)


def _dual_head_kernel(x_ref,
                      w1a_ref, b1a_ref, w2a_ref, b2a_ref, ga_ref, bta_ref,
                      w1b_ref, b1b_ref, w2b_ref, b2b_ref, gb_ref, btb_ref,
                      o1_ref, o2_ref, acc_ref,
                      *, p1_actual, p1_pad, p2_actual, p2_pad, chunk):
    k = pl.program_id(1)

    @pl.when(k == 0)
    def _():
        acc_ref[...] = jnp.zeros_like(acc_ref)

    acc_ref[...] += jnp.dot(x_ref[...].astype(jnp.bfloat16), w1a_ref[...],
                            preferred_element_type=jnp.float32)

    @pl.when(k == pl.num_programs(1) - 1)
    def _():
        tb = o1_ref.shape[0]
        for r in range(0, tb, chunk):
            proj1 = acc_ref[pl.ds(r, chunk), :] + b1a_ref[...].astype(jnp.float32)
            _dual_rows(r, chunk, proj1,
                       w2a_ref, b2a_ref, ga_ref, bta_ref,
                       w1b_ref, b1b_ref, w2b_ref, b2b_ref, gb_ref, btb_ref,
                       o1_ref, o2_ref, p1_actual, p1_pad, p2_actual, p2_pad)


def _dual_head_kernel_1k(x_ref,
                         w1a_ref, b1a_ref, w2a_ref, b2a_ref, ga_ref, bta_ref,
                         w1b_ref, b1b_ref, w2b_ref, b2b_ref, gb_ref, btb_ref,
                         o1_ref, o2_ref,
                         *, p1_actual, p1_pad, p2_actual, p2_pad, chunk):
    tb = o1_ref.shape[0]
    for r in range(0, tb, chunk):
        proj1 = jnp.dot(x_ref[pl.ds(r, chunk), :].astype(jnp.bfloat16),
                        w1a_ref[...], preferred_element_type=jnp.float32)
        proj1 = proj1 + b1a_ref[...].astype(jnp.float32)
        _dual_rows(r, chunk, proj1,
                   w2a_ref, b2a_ref, ga_ref, bta_ref,
                   w1b_ref, b1b_ref, w2b_ref, b2b_ref, gb_ref, btb_ref,
                   o1_ref, o2_ref, p1_actual, p1_pad, p2_actual, p2_pad)


# ---------------------------------------------------------------------------
# Parameter preparation (done once, outside the hot path)
# ---------------------------------------------------------------------------
def _prepare_head_params(p, *, k_tile=1024):
    """Pad weights to 128-multiple lanes, pick the K tile, cast weights bf16."""
    e, pd = p["w1"].shape
    tk = _pick_k_tile(e, k_tile)
    e_pad = _round_up(e, tk)
    p_pad = _round_up(pd, 128)
    return {
        "e": e, "p": pd, "e_pad": e_pad, "p_pad": p_pad, "tk": tk,
        "w1": _pad2d(p["w1"], e_pad, p_pad).astype(jnp.bfloat16),
        "w2": _pad2d(p["w2"], p_pad, p_pad).astype(jnp.bfloat16),
        "b1": _pad_row(p["b1"], p_pad).astype(jnp.float32),
        "b2": _pad_row(p["b2"], p_pad).astype(jnp.float32),
        "gamma": _pad_row(p["gamma"], p_pad).astype(jnp.float32),
        "beta": _pad_row(p["beta"], p_pad).astype(jnp.float32),
    }


def _make_w1b_for_dual(kp_a, kp_b):
    """Head-B projector weight with rows matched to head-A's padded width.

    Rows beyond the real kp_b['e'] are zeros.  Precomputed once so no HBM copy
    is materialized per forward call.
    """
    p1_pad = kp_a["p_pad"]
    assert kp_b["w1"].shape[0] >= p1_pad
    return kp_b["w1"][:p1_pad, :]


# ---------------------------------------------------------------------------
# Wrappers
# ---------------------------------------------------------------------------
def projection_head_forward(x, kp, *, batch_tile=None, out_dtype=None):
    """Apply one Projection_Head with a single fused, K-tiled Pallas kernel."""
    B, E = x.shape
    assert E == kp["e"], "feature dim mismatch"
    e_pad, p_pad, tk = kp["e_pad"], kp["p_pad"], kp["tk"]
    out_dtype = x.dtype if out_dtype is None else out_dtype

    tb = _pick_batch_tile(B, batch_tile)
    b_pad = _round_up(B, tb)
    nk = e_pad // tk
    chunk = _row_chunk(tb)

    # Skip the HBM pad copy when no padding is actually required.
    x_p = x if (b_pad == B and e_pad == E) else \
        jnp.pad(x, ((0, b_pad - B), (0, e_pad - E)))

    x_isz = jnp.dtype(x.dtype).itemsize
    out_isz = jnp.dtype(out_dtype).itemsize
    small_const = 4 * p_pad * 4                       # b1, b2, gamma, beta (f32)

    # VMEM budget (explicit scoped limit)
    if nk > 1:
        w1_vmem, acc_vmem = 2 * tk * p_pad * 2, tb * p_pad * 4
    else:
        w1_vmem, acc_vmem = e_pad * p_pad * 2, 0      # resident, single-buffered
    buf_bytes = (2 * tb * tk * x_isz + w1_vmem + acc_vmem
                 + 2 * tb * p_pad * out_isz
                 + p_pad * p_pad * 2 + small_const)

    # cost estimate: w1 is re-streamed once per batch tile
    n_btiles = b_pad // tb
    flops = 2 * b_pad * p_pad * (e_pad + p_pad)
    bytes_accessed = (b_pad * e_pad * x_isz
                      + e_pad * p_pad * 2 * n_btiles
                      + p_pad * p_pad * 2 + small_const
                      + b_pad * p_pad * out_isz)

    consts = (kp["b1"], kp["w2"], kp["b2"], kp["gamma"], kp["beta"])
    const_specs = [_const_spec(c) for c in consts]

    if nk == 1:
        kernel = functools.partial(_projection_head_kernel_1k,
                                   p_actual=kp["p"], p_pad=p_pad, chunk=chunk)
        grid = (b_pad // tb,)
        in_specs = ([pl.BlockSpec((tb, tk), lambda i: (i, 0)),
                     _const_spec(kp["w1"])] + const_specs)
        out_specs = pl.BlockSpec((tb, p_pad), lambda i: (i, 0))
        scratch = []
        dims = ("parallel",)
    else:
        kernel = functools.partial(_projection_head_kernel,
                                   p_actual=kp["p"], p_pad=p_pad, chunk=chunk)
        grid = (b_pad // tb, nk)
        in_specs = ([pl.BlockSpec((tb, tk), lambda i, k: (i, k)),
                     pl.BlockSpec((tk, p_pad), lambda i, k: (k, 0))]
                    + const_specs)
        out_specs = pl.BlockSpec((tb, p_pad), lambda i, k: (i, 0))
        scratch = [pltpu.VMEM((tb, p_pad), jnp.float32)]
        dims = ("parallel", "arbitrary")

    out = pl.pallas_call(
        kernel,
        out_shape=jax.ShapeDtypeStruct((b_pad, p_pad), out_dtype),
        grid_spec=pltpu.PrefetchScalarGridSpec(
            num_scalar_prefetch=0, grid=grid,
            in_specs=in_specs, out_specs=out_specs, scratch_shapes=scratch),
        compiler_params=pltpu.CompilerParams(
            dimension_semantics=dims,
            vmem_limit_bytes=_vmem_limit(buf_bytes)),
        cost_estimate=pl.CostEstimate(
            flops=flops, transcendentals=b_pad * p_pad,
            bytes_accessed=bytes_accessed),
    )(x_p, kp["w1"], *consts)

    return out[:B, :kp["p"]]


def dual_projection_head_forward(x, kp_a, kp_b, *, w1b=None,
                                 batch_tile=None, out_dtype=None):
    """Fused model + projection_head forward (retrieval_parallel=True)."""
    B, E = x.shape
    assert E == kp_a["e"] and kp_b["e"] == kp_a["p"]
    e_pad, tk = kp_a["e_pad"], kp_a["tk"]
    p1_pad, p2_pad = kp_a["p_pad"], kp_b["p_pad"]
    out_dtype = x.dtype if out_dtype is None else out_dtype

    tb = _pick_batch_tile(B, batch_tile)
    b_pad = _round_up(B, tb)
    nk = e_pad // tk
    chunk = _row_chunk(tb)

    if w1b is None:
        w1b = _make_w1b_for_dual(kp_a, kp_b)

    x_p = x if (b_pad == B and e_pad == E) else \
        jnp.pad(x, ((0, b_pad - B), (0, e_pad - E)))

    x_isz = jnp.dtype(x.dtype).itemsize
    out_isz = jnp.dtype(out_dtype).itemsize
    small_const = 4 * p1_pad * 4 + 4 * p2_pad * 4
    resident_w = (p1_pad * p1_pad + p1_pad * p2_pad + p2_pad * p2_pad) * 2

    if nk > 1:
        w1a_vmem, acc_vmem = 2 * tk * p1_pad * 2, tb * p1_pad * 4
    else:
        w1a_vmem, acc_vmem = e_pad * p1_pad * 2, 0
    buf_bytes = (2 * tb * tk * x_isz + w1a_vmem + acc_vmem
                 + 2 * tb * (p1_pad + p2_pad) * out_isz
                 + resident_w + small_const)

    n_btiles = b_pad // tb
    flops = 2 * b_pad * (e_pad * p1_pad + p1_pad * p1_pad
                         + p1_pad * p2_pad + p2_pad * p2_pad)
    bytes_accessed = (b_pad * e_pad * x_isz
                      + e_pad * p1_pad * 2 * n_btiles
                      + resident_w + small_const
                      + b_pad * (p1_pad + p2_pad) * out_isz)

    consts = (kp_a["b1"], kp_a["w2"], kp_a["b2"], kp_a["gamma"], kp_a["beta"],
              w1b, kp_b["b1"], kp_b["w2"], kp_b["b2"], kp_b["gamma"], kp_b["beta"])
    const_specs = [_const_spec(c) for c in consts]

    common = dict(p1_actual=kp_a["p"], p1_pad=p1_pad,
                  p2_actual=kp_b["p"], p2_pad=p2_pad, chunk=chunk)
    if nk == 1:
        kernel = functools.partial(_dual_head_kernel_1k, **common)
        grid = (b_pad // tb,)
        in_specs = ([pl.BlockSpec((tb, tk), lambda i: (i, 0)),
                     _const_spec(kp_a["w1"])] + const_specs)
        out_specs = [pl.BlockSpec((tb, p1_pad), lambda i: (i, 0)),
                     pl.BlockSpec((tb, p2_pad), lambda i: (i, 0))]
        scratch = []
        dims = ("parallel",)
    else:
        kernel = functools.partial(_dual_head_kernel, **common)
        grid = (b_pad // tb, nk)
        in_specs = ([pl.BlockSpec((tb, tk), lambda i, k: (i, k)),
                     pl.BlockSpec((tk, p1_pad), lambda i, k: (k, 0))]
                    + const_specs)
        out_specs = [pl.BlockSpec((tb, p1_pad), lambda i, k: (i, 0)),
                     pl.BlockSpec((tb, p2_pad), lambda i, k: (i, 0))]
        scratch = [pltpu.VMEM((tb, p1_pad), jnp.float32)]
        dims = ("parallel", "arbitrary")

    y1, y2 = pl.pallas_call(
        kernel,
        out_shape=(jax.ShapeDtypeStruct((b_pad, p1_pad), out_dtype),
                   jax.ShapeDtypeStruct((b_pad, p2_pad), out_dtype)),
        grid_spec=pltpu.PrefetchScalarGridSpec(
            num_scalar_prefetch=0, grid=grid,
            in_specs=in_specs, out_specs=out_specs, scratch_shapes=scratch),
        compiler_params=pltpu.CompilerParams(
            dimension_semantics=dims,
            vmem_limit_bytes=_vmem_limit(buf_bytes)),
        cost_estimate=pl.CostEstimate(
            flops=flops, transcendentals=b_pad * (p1_pad + p2_pad),
            bytes_accessed=bytes_accessed),
    )(x_p, kp_a["w1"], *consts)

    return y1[:B, :kp_a["p"]], y2[:B, :kp_b["p"]]


# ---------------------------------------------------------------------------
# Deterministic parameter construction (nn.Linear / nn.LayerNorm shapes)
# ---------------------------------------------------------------------------
def make_projection_head_params(key, embedding_dim, projection_dim):
    k1, k2, k3, k4 = jax.random.split(key, 4)
    scale1 = 1.0 / jnp.sqrt(embedding_dim)
    scale2 = 1.0 / jnp.sqrt(projection_dim)
    # PyTorch Linear stores weight as [out, in]; we keep the transposed
    # [in, out] layout so the kernel computes x @ W (same math as x @ W_t.T).
    return {
        "w1": (jax.random.uniform(k1, (embedding_dim, projection_dim),
                                  jnp.float32, -1.0, 1.0) * scale1),
        "b1": (jax.random.uniform(k2, (projection_dim,),
                                  jnp.float32, -1.0, 1.0) * scale1),
        "w2": (jax.random.uniform(k3, (projection_dim, projection_dim),
                                  jnp.float32, -1.0, 1.0) * scale2),
        "b2": (jax.random.uniform(k4, (projection_dim,),
                                  jnp.float32, -1.0, 1.0) * scale2),
        "gamma": jnp.ones((projection_dim,), jnp.float32),
        "beta": jnp.zeros((projection_dim,), jnp.float32),
    }


class GeneEncoderMLP:
    """JAX/Pallas port of GeneEncoder(model_name='MLP')."""

    def __init__(self, input_gene_dimension, output_dimension,
                 latent_embedding_dimension, key, *, batch_tile=None,
                 k_tile=1024):
        k_model, k_head = jax.random.split(key)
        self.model_params = make_projection_head_params(
            k_model, input_gene_dimension, output_dimension)
        self.head_params = make_projection_head_params(
            k_head, output_dimension, latent_embedding_dimension)
        self.batch_tile = batch_tile     # sweepable per TPU generation
        # kernel-ready (padded, bf16-weight) parameter sets, built once
        self._model_kp = _prepare_head_params(self.model_params, k_tile=k_tile)
        self._head_kp = _prepare_head_params(self.head_params, k_tile=k_tile)
        # head-B first weight resized once for the fused dual-head kernel
        self._w1b_dual = _make_w1b_for_dual(self._model_kp, self._head_kp)

    def forward(self, x, retrieval_parallel=False):
        if retrieval_parallel:
            return dual_projection_head_forward(
                x, self._model_kp, self._head_kp, w1b=self._w1b_dual,
                batch_tile=self.batch_tile)
        return projection_head_forward(x, self._model_kp,
                                       batch_tile=self.batch_tile)

    def forward_head(self, x):
        return projection_head_forward(x, self._head_kp,
                                       batch_tile=self.batch_tile)


# ---------------------------------------------------------------------------
# Reference (plain JAX, f32) for sanity checking
# ---------------------------------------------------------------------------
def _projection_head_ref(x, p):
    proj = x @ p["w1"] + p["b1"]
    h = 0.5 * proj * (1.0 + lax.erf(proj / jnp.sqrt(2.0)))
    h = h @ p["w2"] + p["b2"]
    h = h + proj
    mean = h.mean(-1, keepdims=True)
    var = ((h - mean) ** 2).mean(-1, keepdims=True)
    return (h - mean) / jnp.sqrt(var + 1e-5) * p["gamma"] + p["beta"]


if __name__ == "__main__":
    key = jax.random.PRNGKey(0)
    k_p1, k_p2, k_x1, k_x2 = jax.random.split(key, 4)

    # ---- case 1: small gene dim -> single-K-step kernels (nk == 1) ----
    batch = 8
    input_gene_dimension = 32
    output_dimension = 64
    latent_embedding_dimension = 32

    enc = GeneEncoderMLP(input_gene_dimension, output_dimension,
                         latent_embedding_dimension, k_p1)
    x = jax.random.normal(k_x1, (batch, input_gene_dimension), jnp.float32)

    out = jax.block_until_ready(enc.forward(x))
    model_out, head_out = jax.block_until_ready(
        enc.forward(x, retrieval_parallel=True))
    head_only = jax.block_until_ready(enc.forward_head(out))

    ref_model = _projection_head_ref(x, enc.model_params)
    ref_head = _projection_head_ref(ref_model, enc.head_params)

    assert out.shape == (batch, output_dimension)
    assert model_out.shape == (batch, output_dimension)
    assert head_out.shape == (batch, latent_embedding_dimension)
    assert head_only.shape == (batch, latent_embedding_dimension)
    # bf16 MXU matmuls with f32 accumulation -> slightly looser tolerance
    assert jnp.allclose(out, ref_model, atol=5e-2, rtol=5e-2)
    assert jnp.allclose(model_out, ref_model, atol=5e-2, rtol=5e-2)
    assert jnp.allclose(head_out, ref_head, atol=5e-2, rtol=5e-2)

    # ---- case 2: larger gene dim + small k_tile -> K-tiled kernels (nk > 1) ----
    enc2 = GeneEncoderMLP(300, output_dimension, latent_embedding_dimension,
                          k_p2, k_tile=128)
    x2 = jax.random.normal(k_x2, (batch, 300), jnp.float32)

    out2 = jax.block_until_ready(enc2.forward(x2))
    m2, h2 = jax.block_until_ready(enc2.forward(x2, retrieval_parallel=True))

    ref_model2 = _projection_head_ref(x2, enc2.model_params)
    ref_head2 = _projection_head_ref(ref_model2, enc2.head_params)

    assert out2.shape == (batch, output_dimension)
    assert m2.shape == (batch, output_dimension)
    assert h2.shape == (batch, latent_embedding_dimension)
    assert jnp.allclose(out2, ref_model2, atol=5e-2, rtol=5e-2)
    assert jnp.allclose(m2, ref_model2, atol=5e-2, rtol=5e-2)
    assert jnp.allclose(h2, ref_head2, atol=5e-2, rtol=5e-2)

    print("KERNEL_OK")
</pallas_src>

<mosaic_0001>
module attributes {stable_mosaic.version = 11 : i64} {
  func.func @_projection_head_kernel_1k(%arg0: i32, %arg1: memref<256x128xf32, #tpu.memory_space<vmem>>, %arg2: memref<128x128xbf16, #tpu.memory_space<vmem>>, %arg3: memref<1x128xf32, #tpu.memory_space<vmem>>, %arg4: memref<128x128xbf16, #tpu.memory_space<vmem>>, %arg5: memref<1x128xf32, #tpu.memory_space<vmem>>, %arg6: memref<1x128xf32, #tpu.memory_space<vmem>>, %arg7: memref<1x128xf32, #tpu.memory_space<vmem>>, %arg8: memref<256x128xf32, #tpu.memory_space<vmem>>) attributes {dimension_semantics = [#tpu.dimension_semantics<parallel>], iteration_bounds = array<i64: 1>, scalar_prefetch = 0 : i64, scratch_operands = 0 : i64, tpu.core_type = #tpu.core_type<tc>, window_params = [{transform_indices = @transform_0, window_bounds = array<i64: 256, 128>}, {pipeline_mode = #tpu.pipeline_mode<synchronous>, transform_indices = @transform_1, window_bounds = array<i64: 128, 128>}, {pipeline_mode = #tpu.pipeline_mode<synchronous>, transform_indices = @transform_2, window_bounds = array<i64: 1, 128>}, {pipeline_mode = #tpu.pipeline_mode<synchronous>, transform_indices = @transform_3, window_bounds = array<i64: 128, 128>}, {pipeline_mode = #tpu.pipeline_mode<synchronous>, transform_indices = @transform_4, window_bounds = array<i64: 1, 128>}, {pipeline_mode = #tpu.pipeline_mode<synchronous>, transform_indices = @transform_5, window_bounds = array<i64: 1, 128>}, {pipeline_mode = #tpu.pipeline_mode<synchronous>, transform_indices = @transform_6, window_bounds = array<i64: 1, 128>}, {transform_indices = @transform_7, window_bounds = array<i64: 256, 128>}]} {
    %c0 = arith.constant 0 : index
    %c0_0 = arith.constant 0 : index
    %0 = vector.load %arg1[%c0, %c0_0] : memref<256x128xf32, #tpu.memory_space<vmem>>, vector<128x128xf32>
    %1 = arith.truncf %0 : vector<128x128xf32> to vector<128x128xbf16>
    %c0_1 = arith.constant 0 : index
    %c0_2 = arith.constant 0 : index
    %2 = vector.load %arg2[%c0_1, %c0_2] : memref<128x128xbf16, #tpu.memory_space<vmem>>, vector<128x128xbf16>
    %cst = arith.constant dense<0.000000e+00> : vector<128x128xf32>
    %3 = tpu.matmul %1, %2, %cst {dimension_numbers = #tpu.dot_dimension_numbers<[1], [0], [0], [1], [0, 0, 1, 1], [], []>} : vector<128x128xbf16>, vector<128x128xbf16>, vector<128x128xf32> -> vector<128x128xf32>
    %c0_3 = arith.constant 0 : index
    %c0_4 = arith.constant 0 : index
    %4 = vector.load %arg3[%c0_3, %c0_4] : memref<1x128xf32, #tpu.memory_space<vmem>>, vector<1x128xf32>
    %5 = vector.broadcast %4 : vector<1x128xf32> to vector<128x128xf32>
    %6 = arith.addf %3, %5 : vector<128x128xf32>
    %cst_5 = arith.constant 5.000000e-01 : f32
    %7 = vector.broadcast %cst_5 : f32 to vector<128x128xf32>
    %8 = arith.mulf %7, %6 : vector<128x128xf32>
    %cst_6 = arith.constant 0.707106769 : f32
    %9 = vector.broadcast %cst_6 : f32 to vector<128x128xf32>
    %10 = arith.mulf %6, %9 : vector<128x128xf32>
    %11 = math.erf %10 : vector<128x128xf32>
    %cst_7 = arith.constant 1.000000e+00 : f32
    %12 = vector.broadcast %cst_7 : f32 to vector<128x128xf32>
    %13 = arith.addf %12, %11 : vector<128x128xf32>
    %14 = arith.mulf %8, %13 : vector<128x128xf32>
    %15 = arith.truncf %14 : vector<128x128xf32> to vector<128x128xbf16>
    %c0_8 = arith.constant 0 : index
    %c0_9 = arith.constant 0 : index
    %16 = vector.load %arg4[%c0_8, %c0_9] : memref<128x128xbf16, #tpu.memory_space<vmem>>, vector<128x128xbf16>
    %cst_10 = arith.constant dense<0.000000e+00> : vector<128x128xf32>
    %17 = tpu.matmul %15, %16, %cst_10 {dimension_numbers = #tpu.dot_dimension_numbers<[1], [0], [0], [1], [0, 0, 1, 1], [], []>} : vector<128x128xbf16>, vector<128x128xbf16>, vector<128x128xf32> -> vector<128x128xf32>
    %c0_11 = arith.constant 0 : index
    %c0_12 = arith.constant 0 : index
    %18 = vector.load %arg5[%c0_11, %c0_12] : memref<1x128xf32, #tpu.memory_space<vmem>>, vector<1x128xf32>
    %19 = vector.broadcast %18 : vector<1x128xf32> to vector<128x128xf32>
    %20 = arith.addf %17, %19 : vector<128x128xf32>
    %21 = arith.addf %20, %6 : vector<128x128xf32>
    %cst_13 = arith.constant dense<0.000000e+00> : vector<128xf32>
    %22 = vector.multi_reduction <add>, %21, %cst_13 [1] : vector<128x128xf32> to vector<128xf32>
    %23 = vector.shape_cast %22 : vector<128xf32> to vector<128x1xf32>
    %cst_14 = arith.constant 1.562500e-02 : f32
    %24 = vector.broadcast %cst_14 : f32 to vector<128x1xf32>
    %25 = arith.mulf %23, %24 : vector<128x1xf32>
    %26 = vector.broadcast %25 : vector<128x1xf32> to vector<128x128xf32>
    %27 = arith.subf %21, %26 : vector<128x128xf32>
    %28 = tpu.iota {dimensions = array<i32: 1>} : vector<128x128xi32>
    %c64_i32 = arith.constant 64 : i32
    %29 = vector.broadcast %c64_i32 : i32 to vector<128x128xi32>
    %30 = arith.cmpi slt, %28, %29 : vector<128x128xi32>
    %cst_15 = arith.constant 0.000000e+00 : f32
    %31 = vector.broadcast %cst_15 : f32 to vector<128x128xf32>
    %32 = arith.select %30, %27, %31 : vector<128x128xi1>, vector<128x128xf32>
    %33 = arith.mulf %32, %32 : vector<128x128xf32>
    %cst_16 = arith.constant dense<0.000000e+00> : vector<128xf32>
    %34 = vector.multi_reduction <add>, %33, %cst_16 [1] : vector<128x128xf32> to vector<128xf32>
    %35 = vector.shape_cast %34 : vector<128xf32> to vector<128x1xf32>
    %cst_17 = arith.constant 1.562500e-02 : f32
    %36 = vector.broadcast %cst_17 : f32 to vector<128x1xf32>
    %37 = arith.mulf %35, %36 : vector<128x1xf32>
    %cst_18 = arith.constant 9.99999974E-6 : f32
    %38 = vector.broadcast %cst_18 : f32 to vector<128x1xf32>
    %39 = arith.addf %37, %38 : vector<128x1xf32>
    %40 = math.rsqrt %39 : vector<128x1xf32>
    %41 = vector.broadcast %40 : vector<128x1xf32> to vector<128x128xf32>
    %42 = arith.mulf %32, %41 : vector<128x128xf32>
    %c0_19 = arith.constant 0 : index
    %c0_20 = arith.constant 0 : index
    %43 = vector.load %arg6[%c0_19, %c0_20] : memref<1x128xf32, #tpu.memory_space<vmem>>, vector<1x128xf32>
    %44 = vector.broadcast %43 : vector<1x128xf32> to vector<128x128xf32>
    %45 = arith.mulf %42, %44 : vector<128x128xf32>
    %c0_21 = arith.constant 0 : index
    %c0_22 = arith.constant 0 : index
    %46 = vector.load %arg7[%c0_21, %c0_22] : memref<1x128xf32, #tpu.memory_space<vmem>>, vector<1x128xf32>
    %47 = vector.broadcast %46 : vector<1x128xf32> to vector<128x128xf32>
    %48 = arith.addf %45, %47 : vector<128x128xf32>
    %c0_23 = arith.constant 0 : index
    %c0_24 = arith.constant 0 : index
    %49 = vector.load %arg8[%c0_23, %c0_24] : memref<256x128xf32, #tpu.memory_space<vmem>>, vector<128x128xf32>
    tpu.vector_store %arg8[%c0_23, %c0_24], %48 {strides = array<i32>} : memref<256x128xf32, #tpu.memory_space<vmem>>, vector<128x128xf32>,
    %c128 = arith.constant 128 : index
    %c0_25 = arith.constant 0 : index
    %50 = vector.load %arg1[%c128, %c0_25] : memref<256x128xf32, #tpu.memory_space<vmem>>, vector<128x128xf32>
    %51 = arith.truncf %50 : vector<128x128xf32> to vector<128x128xbf16>
    %c0_26 = arith.constant 0 : index
    %c0_27 = arith.constant 0 : index
    %52 = vector.load %arg2[%c0_26, %c0_27] : memref<128x128xbf16, #tpu.memory_space<vmem>>, vector<128x128xbf16>
    %cst_28 = arith.constant dense<0.000000e+00> : vector<128x128xf32>
    %53 = tpu.matmul %51, %52, %cst_28 {dimension_numbers = #tpu.dot_dimension_numbers<[1], [0], [0], [1], [0, 0, 1, 1], [], []>} : vector<128x128xbf16>, vector<128x128xbf16>, vector<128x128xf32> -> vector<128x128xf32>
    %c0_29 = arith.constant 0 : index
    %c0_30 = arith.constant 0 : index
    %54 = vector.load %arg3[%c0_29, %c0_30] : memref<1x128xf32, #tpu.memory_space<vmem>>, vector<1x128xf32>
    %55 = vector.broadcast %54 : vector<1x128xf32> to vector<128x128xf32>
    %56 = arith.addf %53, %55 : vector<128x128xf32>
    %cst_31 = arith.constant 5.000000e-01 : f32
    %57 = vector.broadcast %cst_31 : f32 to vector<128x128xf32>
    %58 = arith.mulf %57, %56 : vector<128x128xf32>
    %cst_32 = arith.constant 0.707106769 : f32
    %59 = vector.broadcast %cst_32 : f32 to vector<128x128xf32>
    %60 = arith.mulf %56, %59 : vector<128x128xf32>
    %61 = math.erf %60 : vector<128x128xf32>
    %cst_33 = arith.constant 1.000000e+00 : f32
    %62 = vector.broadcast %cst_33 : f32 to vector<128x128xf32>
    %63 = arith.addf %62, %61 : vector<128x128xf32>
    %64 = arith.mulf %58, %63 : vector<128x128xf32>
    %65 = arith.truncf %64 : vector<128x128xf32> to vector<128x128xbf16>
    %c0_34 = arith.constant 0 : index
    %c0_35 = arith.constant 0 : index
    %66 = vector.load %arg4[%c0_34, %c0_35] : memref<128x128xbf16, #tpu.memory_space<vmem>>, vector<128x128xbf16>
    %cst_36 = arith.constant dense<0.000000e+00> : vector<128x128xf32>
    %67 = tpu.matmul %65, %66, %cst_36 {dimension_numbers = #tpu.dot_dimension_numbers<[1], [0], [0], [1], [0, 0, 1, 1], [], []>} : vector<128x128xbf16>, vector<128x128xbf16>, vector<128x128xf32> -> vector<128x128xf32>
    %c0_37 = arith.constant 0 : index
    %c0_38 = arith.constant 0 : index
    %68 = vector.load %arg5[%c0_37, %c0_38] : memref<1x128xf32, #tpu.memory_space<vmem>>, vector<1x128xf32>
    %69 = vector.broadcast %68 : vector<1x128xf32> to vector<128x128xf32>
    %70 = arith.addf %67, %69 : vector<128x128xf32>
    %71 = arith.addf %70, %56 : vector<128x128xf32>
    %cst_39 = arith.constant dense<0.000000e+00> : vector<128xf32>
    %72 = vector.multi_reduction <add>, %71, %cst_39 [1] : vector<128x128xf32> to vector<128xf32>
    %73 = vector.shape_cast %72 : vector<128xf32> to vector<128x1xf32>
    %cst_40 = arith.constant 1.562500e-02 : f32
    %74 = vector.broadcast %cst_40 : f32 to vector<128x1xf32>
    %75 = arith.mulf %73, %74 : vector<128x1xf32>
    %76 = vector.broadcast %75 : vector<128x1xf32> to vector<128x128xf32>
    %77 = arith.subf %71, %76 : vector<128x128xf32>
    %78 = tpu.iota {dimensions = array<i32: 1>} : vector<128x128xi32>
    %c64_i32_41 = arith.constant 64 : i32
    %79 = vector.broadcast %c64_i32_41 : i32 to vector<128x128xi32>
    %80 = arith.cmpi slt, %78, %79 : vector<128x128xi32>
    %cst_42 = arith.constant 0.000000e+00 : f32
    %81 = vector.broadcast %cst_42 : f32 to vector<128x128xf32>
    %82 = arith.select %80, %77, %81 : vector<128x128xi1>, vector<128x128xf32>
    %83 = arith.mulf %82, %82 : vector<128x128xf32>
    %cst_43 = arith.constant dense<0.000000e+00> : vector<128xf32>
    %84 = vector.multi_reduction <add>, %83, %cst_43 [1] : vector<128x128xf32> to vector<128xf32>
    %85 = vector.shape_cast %84 : vector<128xf32> to vector<128x1xf32>
    %cst_44 = arith.constant 1.562500e-02 : f32
    %86 = vector.broadcast %cst_44 : f32 to vector<128x1xf32>
    %87 = arith.mulf %85, %86 : vector<128x1xf32>
    %cst_45 = arith.constant 9.99999974E-6 : f32
    %88 = vector.broadcast %cst_45 : f32 to vector<128x1xf32>
    %89 = arith.addf %87, %88 : vector<128x1xf32>
    %90 = math.rsqrt %89 : vector<128x1xf32>
    %91 = vector.broadcast %90 : vector<128x1xf32> to vector<128x128xf32>
    %92 = arith.mulf %82, %91 : vector<128x128xf32>
    %c0_46 = arith.constant 0 : index
    %c0_47 = arith.constant 0 : index
    %93 = vector.load %arg6[%c0_46, %c0_47] : memref<1x128xf32, #tpu.memory_space<vmem>>, vector<1x128xf32>
    %94 = vector.broadcast %93 : vector<1x128xf32> to vector<128x128xf32>
    %95 = arith.mulf %92, %94 : vector<128x128xf32>
    %c0_48 = arith.constant 0 : index
    %c0_49 = arith.constant 0 : index
    %96 = vector.load %arg7[%c0_48, %c0_49] : memref<1x128xf32, #tpu.memory_space<vmem>>, vector<1x128xf32>
    %97 = vector.broadcast %96 : vector<1x128xf32> to vector<128x128xf32>
    %98 = arith.addf %95, %97 : vector<128x128xf32>
    %c128_50 = arith.constant 128 : index
    %c0_51 = arith.constant 0 : index
    %99 = vector.load %arg8[%c128_50, %c0_51] : memref<256x128xf32, #tpu.memory_space<vmem>>, vector<128x128xf32>
    tpu.vector_store %arg8[%c128_50, %c0_51], %98 {strides = array<i32>} : memref<256x128xf32, #tpu.memory_space<vmem>>, vector<128x128xf32>,
    return
  }
  func.func @transform_0(%arg0: i32) -> (i32, i32) {
    %c0_i32 = arith.constant 0 : i32
    %c0_i32_0 = arith.constant 0 : i32
    return %arg0, %c0_i32 : i32, i32
  }
  func.func @transform_1(%arg0: i32) -> (i32, i32) {
    %c0_i32 = arith.constant 0 : i32
    %c0_i32_0 = arith.constant 0 : i32
    %c0_i32_1 = arith.constant 0 : i32
    return %c0_i32, %c0_i32_0 : i32, i32
  }
  func.func @transform_2(%arg0: i32) -> (i32, i32) {
    %c0_i32 = arith.constant 0 : i32
    %c0_i32_0 = arith.constant 0 : i32
    %c0_i32_1 = arith.constant 0 : i32
    return %c0_i32, %c0_i32_0 : i32, i32
  }
  func.func @transform_3(%arg0: i32) -> (i32, i32) {
    %c0_i32 = arith.constant 0 : i32
    %c0_i32_0 = arith.constant 0 : i32
    %c0_i32_1 = arith.constant 0 : i32
    return %c0_i32, %c0_i32_0 : i32, i32
  }
  func.func @transform_4(%arg0: i32) -> (i32, i32) {
    %c0_i32 = arith.constant 0 : i32
    %c0_i32_0 = arith.constant 0 : i32
    %c0_i32_1 = arith.constant 0 : i32
    return %c0_i32, %c0_i32_0 : i32, i32
  }
  func.func @transform_5(%arg0: i32) -> (i32, i32) {
    %c0_i32 = arith.constant 0 : i32
    %c0_i32_0 = arith.constant 0 : i32
    %c0_i32_1 = arith.constant 0 : i32
    return %c0_i32, %c0_i32_0 : i32, i32
  }
  func.func @transform_6(%arg0: i32) -> (i32, i32) {
    %c0_i32 = arith.constant 0 : i32
    %c0_i32_0 = arith.constant 0 : i32
    %c0_i32_1 = arith.constant 0 : i32
    return %c0_i32, %c0_i32_0 : i32, i32
  }
  func.func @transform_7(%arg0: i32) -> (i32, i32) {
    %c0_i32 = arith.constant 0 : i32
    %c0_i32_0 = arith.constant 0 : i32
    return %arg0, %c0_i32 : i32, i32
  }
}

</mosaic_0001>

<bundles_post_ra>
// kernel: tpu_custom_call.1
= control target key start
LH: loop header
LB: loop body
LE: loop exit
PB: predicated region body
PF: predicated region fallthrough
CT: control target
= control target key end

     0   :  { %12 = vsyncpa [#allocation3], 0  ;;  %s2745_s0 = inlined_call_operand.hbm [shape: f32[256,128], index: 0, kind: input, shape index: {}]   ;;  %s2746_s1 = inlined_call_operand.hbm [shape: bf16[128,128], index: 1, kind: input, shape index: {}]   ;;  %s2747_s2 = inlined_call_operand.vmem [shape: f32[1,128], index: 2, kind: input, shape index: {}]   ;;  %s2748_s3 = inlined_call_operand.hbm [shape: bf16[128,128], index: 3, kind: input, shape index: {}]   ;;  %s2749_s4 = inlined_call_operand.vmem [shape: f32[1,128], index: 4, kind: input, shape index: {}]   ;;  %s2750_s5 = inlined_call_operand.vmem [shape: f32[1,128], index: 5, kind: input, shape index: {}]   ;;  %s2751_s6 = inlined_call_operand.vmem [shape: f32[1,128], index: 6, kind: input, shape index: {}]   ;;  %s2752_s7 = inlined_call_operand.hbm [shape: f32[256,128], index: 7, kind: output, shape index: {}]  }
   0x1   :  { %13 = vsyncpa [#allocation6], 0 }
   0x2   :  { %14 = vsyncpa [#allocation4], 0  ;;  %s2012_s24 = smov [#allocation5]  }
   0x3   :  { %s32_s25 = sshll.u32 %s2012_s24, 4  ;;  %s33_s25 = int_to_ptr.vmem [resolvable:$true] %s32_s25 }
   0x4   :  { %s1934_s26 = scalar_lea.vmem %s33_s25, 1024  ;;  %p1939_p1 = scmp.lt.s32.totalorder %s33_s25, %s33_s25 }
   0x5   :  { %p1935_p0 = scmp.ne.s32.totalorder %s33_s25, %s1934_s26  ;;  %p1940_p2 = scmp.lt.s32.totalorder %s1934_s26, %s1934_s26 }
   0x7   :  { %p1941_p3 = por %p1940_p2, %p1939_p1 }
   0x9   :  { %p1942_p4 = pnand %p1941_p3, %p1935_p0 }
   0xb   :  { %1945 = shalt.err (!%p1942_p4)
}
   0xc   :  { %s2013_s27 = smov 64   ;;  %s2014_s28 = smov 4  }
   0xd   :  { %38 = dma.hbm_to_vmem [thread:$0]  %s2746_s1, 1024, %s33_s25, [#allocation6], %s2013_s27, %s2013_s27, %s2014_s28  }
   0xe   :  { %s2015_s8 = smov [#allocation2]  }
   0xf   :  { %s20_s9 = sshll.u32 %s2015_s8, 4  ;;  %s21_s9 = int_to_ptr.vmem [resolvable:$true] %s20_s9 }
  0x10   :  { %s1954_s10 = scalar_lea.vmem %s21_s9, 4096  ;;  %p1959_p6 = scmp.lt.s32.totalorder %s21_s9, %s21_s9 }
  0x11   :  { %p1955_p5 = scmp.ne.s32.totalorder %s21_s9, %s1954_s10  ;;  %p1960_p7 = scmp.lt.s32.totalorder %s1954_s10, %s1954_s10 }
  0x13   :  { %p1961_p8 = por %p1960_p7, %p1959_p6 }
  0x15   :  { %p1962_p9 = pnand %p1961_p8, %p1955_p5 }
  0x17   :  { %1965 = shalt.err (!%p1962_p9)
}
  0x18   :  { %s2016_s11 = smov 128   ;;  %s2017_s12 = smov 8  }
  0x19   :  { %26 = dma.hbm_to_vmem [thread:$0]  %s2745_s0, 4096, %s21_s9, [#allocation3], %s2016_s11, %s2016_s11, %s2017_s12  }
  0x1a   :  { %s2018_s1 = smov [#allocation7]  }
  0x1b   :  { %s46_s15 = sshll.u32 %s2018_s1, 4  ;;  %s47_s15 = int_to_ptr.vmem [resolvable:$true] %s46_s15 }
  0x1c   :  { %s1974_s16 = scalar_lea.vmem %s47_s15, 1024  ;;  %p1979_p11 = scmp.lt.s32.totalorder %s47_s15, %s47_s15 }
  0x1d   :  { %p1975_p10 = scmp.ne.s32.totalorder %s47_s15, %s1974_s16  ;;  %p1980_p12 = scmp.lt.s32.totalorder %s1974_s16, %s1974_s16 }
  0x1f   :  { %p1981_p13 = por %p1980_p12, %p1979_p11 }
  0x21   :  { %p1982_p0 = pnand %p1981_p13, %p1975_p10 }
  0x23   :  { %1985 = shalt.err (!%p1982_p0)
}
  0x24   :  { %52 = dma.hbm_to_vmem [thread:$0]  %s2748_s3, 1024, %s47_s15, [#allocation6], %s2013_s27, %s2013_s27, %s2014_s28  }
  0x25   :  { %2006 = dma.done.wait [#allocation3], 4096  }
  0x26   :  { %2007 = vsyncadd [#allocation3], 4294963200 }
  0x27   :  { %2008 = dma.done.wait [#allocation6], 2048  }
  0x28   :  { %2009 = vsyncadd [#allocation6], 4294965248  ;;  %v1766_v0 = vld [vmem:[#allocation5 + $0x38] sm:$0xff]   ;;  %v1767_v1 = vld [vmem:[#allocation5 + $0x30] sm:$0xff]  }
  0x29   :  { %1630 = vmatprep.subr.bf16.mxu0 %v1766_v0  ;;  %v1768_v2 = vld [vmem:[#allocation5 + $0x28] sm:$0xff]   ;;  %v1769_v3 = vld [vmem:[#allocation5 + $0x20] sm:$0xff]   ;;  %v1770_v7 = vld [vmem:[#allocation5 + $0x18] sm:$0xff]  }
  0x2a   :  { %1631 = vmatpush3.bf16.msra.mxu0 %v1766_v0  ;;  %v69_v4 = vld [vmem:[#allocation2] sm:$0xff]  ;;  %v70_v5 = vld [vmem:[#allocation2 + $0x8] sm:$0xff]  ;;  %v1771_v8 = vld [vmem:[#allocation5 + $0x10] sm:$0xff]  }
  0x2b   :  { %1632 = vmatprep.subr.bf16.mxu0 %v1767_v1  ;;  %v85_v6 = vpack.c.bf16 %v70_v5, %v69_v4  ;;  %v1772_v9 = vld [vmem:[#allocation5 + $0x8] sm:$0xff]   ;;  %v1773_v10 = vld [vmem:[#allocation5] sm:$0xff]   ;;  %v71_v11 = vld [vmem:[#allocation2 + $0x10] sm:$0xff] }
  0x2c   :  { %v72_v12 = vld [vmem:[#allocation2 + $0x18] sm:$0xff]  ;;  %v73_v14 = vld [vmem:[#allocation2 + $0x20] sm:$0xff]  ;;  %v74_v15 = vld [vmem:[#allocation2 + $0x28] sm:$0xff] }
  0x2d   :  { %1646 = vmatprep.mubr.bf16.mxu0 %v85_v6  ;;  %v1774_v13 = vld [vmem:[#allocation5 + $0x38] sm:$0xff]   ;;  %v86_v16 = vpack.c.bf16 %v72_v12, %v71_v11  ;;  %v1775_v17 = vld [vmem:[#allocation5 + $0x30] sm:$0xff]   ;;  %v87_v18 = vpack.c.bf16 %v74_v15, %v73_v14  ;;  %v1776_v21 = vld [vmem:[#allocation5 + $0x28] sm:$0xff]  }
  0x2e   :  { %1633 = vmatpush3.bf16.msra.mxu0 %v1767_v1  ;;  %v75_v19 = vld [vmem:[#allocation2 + $0x30] sm:$0xff]  ;;  %v76_v20 = vld [vmem:[#allocation2 + $0x38] sm:$0xff]  ;;  %v77_v22 = vld [vmem:[#allocation2 + $0x40] sm:$0xff] }
  0x2f   :  { %1634 = vmatprep.subr.bf16.mxu0 %v1768_v2  ;;  %v78_v23 = vld [vmem:[#allocation2 + $0x48] sm:$0xff]  ;;  %v88_v24 = vpack.c.bf16 %v76_v20, %v75_v19  ;;  %v1777_v26 = vld [vmem:[#allocation5 + $0x20] sm:$0xff]   ;;  %v79_v27 = vld [vmem:[#allocation2 + $0x50] sm:$0xff] }
  0x30   :  { %v89_v25 = vpack.c.bf16 %v78_v23, %v77_v22  ;;  %v80_v28 = vld [vmem:[#allocation2 + $0x58] sm:$0xff]  ;;  %v81_v30 = vld [vmem:[#allocation2 + $0x60] sm:$0xff]  ;;  %v82_v31 = vld [vmem:[#allocation2 + $0x68] sm:$0xff] }
  0x31   :  { %v1778_v29 = vld [vmem:[#allocation5 + $0x18] sm:$0xff]   ;;  %v90_v32 = vpack.c.bf16 %v80_v28, %v79_v27  ;;  %v91_v33 = vpack.c.bf16 %v82_v31, %v81_v30  ;;  %v1779_v34 = vld [vmem:[#allocation5 + $0x10] sm:$0xff]   ;;  %v1780_v37 = vld [vmem:[#allocation5 + $0x8] sm:$0xff]  }
  0x32   :  { %1635 = vmatpush3.bf16.msra.mxu0 %v1768_v2  ;;  %v83_v35 = vld [vmem:[#allocation2 + $0x70] sm:$0xff]  ;;  %v84_v36 = vld [vmem:[#allocation2 + $0x78] sm:$0xff]  ;;  %v790_v38 = vld [vmem:[#allocation2 + $0x80] sm:$0xff] }
  0x33   :  { %1636 = vmatprep.subr.bf16.mxu0 %v1769_v3  ;;  %v791_v39 = vld [vmem:[#allocation2 + $0x88] sm:$0xff]  ;;  %v92_v40 = vpack.c.bf16 %v84_v36, %v83_v35  ;;  %v1781_v42 = vld [vmem:[#allocation5] sm:$0xff]   ;;  %v792_v43 = vld [vmem:[#allocation2 + $0x90] sm:$0xff] }
  0x34   :  { %v806_v41 = vpack.c.bf16 %v791_v39, %v790_v38  ;;  %v793_v44 = vld [vmem:[#allocation2 + $0x98] sm:$0xff]  ;;  %v794_v45 = vld [vmem:[#allocation2 + $0xa0] sm:$0xff]  ;;  %v795_v46 = vld [vmem:[#allocation2 + $0xa8] sm:$0xff] }
  0x35   :  { %v807_v47 = vpack.c.bf16 %v793_v44, %v792_v43  ;;  %v808_v48 = vpack.c.bf16 %v795_v46, %v794_v45  ;;  %v796_v49 = vld [vmem:[#allocation2 + $0xb0] sm:$0xff]  ;;  %v797_v50 = vld [vmem:[#allocation2 + $0xb8] sm:$0xff]  ;;  %v798_v51 = vld [vmem:[#allocation2 + $0xc0] sm:$0xff] }
  0x36   :  { %1637 = vmatpush3.bf16.msra.mxu0 %v1769_v3  ;;  %v799_v52 = vld [vmem:[#allocation2 + $0xc8] sm:$0xff]  ;;  %v809_v53 = vpack.c.bf16 %v797_v50, %v796_v49  ;;  %v800_v55 = vld [vmem:[#allocation2 + $0xd0] sm:$0xff]  ;;  %v801_v56 = vld [vmem:[#allocation2 + $0xd8] sm:$0xff] }
  0x37   :  { %1638 = vmatprep.subr.bf16.mxu0 %v1770_v7  ;;  %v810_v54 = vpack.c.bf16 %v799_v52, %v798_v51  ;;  %v802_v57 = vld [vmem:[#allocation2 + $0xe0] sm:$0xff]  ;;  %v803_v58 = vld [vmem:[#allocation2 + $0xe8] sm:$0xff]  ;;  %v811_v59 = vpack.c.bf16 %v801_v56, %v800_v55  ;;  %v804_v61 = vld [vmem:[#allocation2 + $0xf0] sm:$0xff] }
  0x38   :  { %v812_v60 = vpack.c.bf16 %v803_v58, %v802_v57  ;;  %v805_v62 = vld [vmem:[#allocation2 + $0xf8] sm:$0xff]  ;;  %v1783_v1 = vld [vmem:[#allocation7 + $0x30] sm:$0xff]   ;;  %v1784_v2 = vld [vmem:[#allocation7 + $0x28] sm:$0xff]  }
  0x39   :  { %v813_v63 = vpack.c.bf16 %v805_v62, %v804_v61  ;;  %v1782_v0 = vld [vmem:[#allocation7 + $0x38] sm:$0xff]   ;;  %v1785_v3 = vld [vmem:[#allocation7 + $0x20] sm:$0xff]   ;;  %v1787_v5 = vld [vmem:[#allocation7 + $0x10] sm:$0xff]  }
  0x3a   :  { %1639 = vmatpush3.bf16.msra.mxu0 %v1770_v7  ;;  %1662 = vmatprep.subr.bf16.mxu1 %v1782_v0  ;;  %v1786_v4 = vld [vmem:[#allocation7 + $0x18] sm:$0xff]   ;;  %v1788_v6 = vld [vmem:[#allocation7 + $0x8] sm:$0xff]   ;;  %v1789_v7 = vld [vmem:[#allocation7] sm:$0xff]  }
  0x3b   :  { %1640 = vmatprep.subr.bf16.mxu0 %v1771_v8  ;;  %1663 = vmatpush3.bf16.msra.mxu1 %v1782_v0 }
  0x3c   :  { %1664 = vmatprep.subr.bf16.mxu1 %v1783_v1 }
  0x3e   :  { %1641 = vmatpush3.bf16.msra.mxu0 %v1771_v8  ;;  %v2072_v8 = vld [vmem:[#allocation7 + $0x38] sm:$0xff]  }
  0x3f   :  { %1642 = vmatprep.subr.bf16.mxu0 %v1772_v9  ;;  %1665 = vmatpush3.bf16.msra.mxu1 %v1783_v1 }
  0x40   :  { %1666 = vmatprep.subr.bf16.mxu1 %v1784_v2 }
  0x42   :  { %1643 = vmatpush3.bf16.msra.mxu0 %v1772_v9  ;;  %v2078_v9 = vld [vmem:[%s2747_s2] ss:$0 sm:$0xff] }
  0x43   :  { %1644 = vmatprep.subr.bf16.mxu0 %v1773_v10  ;;  %1667 = vmatpush3.bf16.msra.mxu1 %v1784_v2 }
  0x44   :  { %1668 = vmatprep.subr.bf16.mxu1 %v1785_v3 }
  0x46   :  { %1645 = vmatpush3.bf16.msra.mxu0 %v1773_v10 }
  0x47   :  { %1694 = vmatprep.subr.bf16.mxu0 %v1774_v13  ;;  %1669 = vmatpush3.bf16.msra.mxu1 %v1785_v3 }
  0x48   :  { %1670 = vmatprep.subr.bf16.mxu1 %v1786_v4 }
  0x49   :  { %1647 = vmatmul.mubr.bf16.vlgmr.msra.gmra.mxu0 %v86_v16 }
  0x4a   :  { %1695 = vmatpush3.bf16.msra.mxu0 %v1774_v13  ;;  %1650 = vmatprep.mubr.bf16.mxu0 %v87_v18 }
  0x4b   :  { %1696 = vmatprep.subr.bf16.mxu0 %v1775_v17  ;;  %1671 = vmatpush3.bf16.msra.mxu1 %v1786_v4 }
  0x4c   :  { %1672 = vmatprep.subr.bf16.mxu1 %v1787_v5 }
  0x4e   :  { %1697 = vmatpush3.bf16.msra.mxu0 %v1775_v17 }
  0x4f   :  { %1698 = vmatprep.subr.bf16.mxu0 %v1776_v21  ;;  %1673 = vmatpush3.bf16.msra.mxu1 %v1787_v5 }
  0x50   :  { %1674 = vmatprep.subr.bf16.mxu1 %v1788_v6 }
  0x51   :  { %1651 = vmatmul.mubr.bf16.gmra.mxu0 %v88_v24 }
  0x52   :  { %1699 = vmatpush3.bf16.msra.mxu0 %v1776_v21  ;;  %1654 = vmatprep.mubr.bf16.mxu0 %v89_v25 }
  0x53   :  { %1700 = vmatprep.subr.bf16.mxu0 %v1777_v26  ;;  %1675 = vmatpush3.bf16.msra.mxu1 %v1788_v6 }
  0x54   :  { %1676 = vmatprep.subr.bf16.mxu1 %v1789_v7 }
  0x56   :  { %1701 = vmatpush3.bf16.msra.mxu0 %v1777_v26 }
  0x57   :  { %1702 = vmatprep.subr.bf16.mxu0 %v1778_v29  ;;  %1677 = vmatpush3.bf16.msra.mxu1 %v1789_v7 }
  0x58   :  { %1726 = vmatprep.subr.bf16.mxu1 %v2072_v8 }
  0x59   :  { %1655 = vmatmul.mubr.bf16.gmra.mxu0 %v90_v32 }
  0x5a   :  { %1703 = vmatpush3.bf16.msra.mxu0 %v1778_v29  ;;  %1658 = vmatprep.mubr.bf16.mxu0 %v91_v33 }
  0x5b   :  { %1704 = vmatprep.subr.bf16.mxu0 %v1779_v34 }
  0x5e   :  { %1705 = vmatpush3.bf16.msra.mxu0 %v1779_v34 }
  0x5f   :  { %1706 = vmatprep.subr.bf16.mxu0 %v1780_v37 }
  0x61   :  { %1659 = vmatmul.mubr.bf16.gmra.mxu0 %v92_v40 }
  0x62   :  { %1707 = vmatpush3.bf16.msra.mxu0 %v1780_v37  ;;  %1710 = vmatprep.mubr.bf16.mxu0 %v806_v41 }
  0x63   :  { %1708 = vmatprep.subr.bf16.mxu0 %v1781_v42 }
  0x66   :  { %1709 = vmatpush3.bf16.msra.mxu0 %v1781_v42 }
  0x69   :  { %1711 = vmatmul.mubr.bf16.vlgmr.msra.gmra.mxu0 %v807_v47 }
  0x6a   :  { %1714 = vmatprep.mubr.bf16.mxu0 %v808_v48 }
  0x71   :  { %1715 = vmatmul.mubr.bf16.gmra.mxu0 %v809_v53 }
  0x72   :  { %1718 = vmatprep.mubr.bf16.mxu0 %v810_v54 }
  0x79   :  { %1719 = vmatmul.mubr.bf16.gmra.mxu0 %v811_v59 }
  0x7a   :  { %1722 = vmatprep.mubr.bf16.mxu0 %v812_v60 }
  0x81   :  { %1723 = vmatmul.mubr.bf16.gmra.mxu0 %v813_v63 }
 0x109   :  { %v1648_v10 = vpop.f32.mrf.mxu0 }
 0x10a   :  { %v2081_v11 = vadd.f32 %v1648_v10, %v2078_v9 }
 0x10b   :  { %v198_v12 = vpop.f32.mrf.mxu0 }
 0x10c   :  { %v279_v13 = vmul.f32 0.70710677, %v2081_v11  ;;  %v2085_v14 = vadd.f32 %v2078_v9, %v198_v12  ;;  %v263_v56 = vmul.f32 0.5, %v2081_v11 }
 0x10d   :  { %v1649_v15 = vpop.f32.mrf.mxu0 }
 0x10e   :  { %v277_v16 = vmul.f32 0.70710677, %v2085_v14  ;;  %v2089_v17 = vadd.f32 %v1649_v15, %v2078_v9  ;;  %1798 = verf.f32 %v279_v13  ;;  %v261_v58 = vmul.f32 0.5, %v2085_v14 }
 0x10f   :  { %v201_v18 = vpop.f32.mrf.mxu0 }
 0x110   :  { %v280_v19 = vmul.f32 0.70710677, %v2089_v17  ;;  %v2093_v20 = vadd.f32 %v2078_v9, %v201_v18  ;;  %1800 = verf.f32 %v277_v16  ;;  %v264_v49 = vmul.f32 0.5, %v2089_v17 }
 0x111   :  { %v1652_v21 = vpop.f32.mrf.mxu0 }
 0x112   :  { %1802 = verf.f32 %v280_v19  ;;  %v278_v22 = vmul.f32 0.70710677, %v2093_v20  ;;  %v2097_v23 = vadd.f32 %v1652_v21, %v2078_v9  ;;  %v262_v59 = vmul.f32 0.5, %v2093_v20  ;;  %v1791_v19 = vld [vmem:[#allocation7 + $0x30] sm:$0xff]  }
 0x113   :  { %v214_v24 = vpop.f32.mrf.mxu0 }
 0x114   :  { %1804 = verf.f32 %v278_v22  ;;  %v283_v25 = vmul.f32 0.70710677, %v2097_v23  ;;  %v2101_v26 = vadd.f32 %v2078_v9, %v214_v24 }
 0x115   :  { %v1653_v27 = vpop.f32.mrf.mxu0 }
 0x116   :  { %v281_v28 = vmul.f32 0.70710677, %v2101_v26  ;;  %v2105_v29 = vadd.f32 %v1653_v27, %v2078_v9  ;;  %1806 = verf.f32 %v283_v25 }
 0x117   :  { %v217_v30 = vpop.f32.mrf.mxu0 }
 0x118   :  { %v284_v31 = vmul.f32 0.70710677, %v2105_v29  ;;  %v2109_v32 = vadd.f32 %v2078_v9, %v217_v30  ;;  %1808 = verf.f32 %v281_v28  ;;  %v268_v22 = vmul.f32 0.5, %v2105_v29 }
 0x119   :  { %v1656_v33 = vpop.f32.mrf.mxu0 }
 0x11a   :  { %1810 = verf.f32 %v284_v31  ;;  %v282_v34 = vmul.f32 0.70710677, %v2109_v32  ;;  %v2113_v35 = vadd.f32 %v1656_v33, %v2078_v9  ;;  %v267_v33 = vmul.f32 0.5, %v2097_v23 }
 0x11b   :  { %v230_v36 = vpop.f32.mrf.mxu0  ;;  %v1799_v39 = vpop.eup %1798 }
 0x11c   :  { %1812 = verf.f32 %v282_v34  ;;  %v287_v37 = vmul.f32 0.70710677, %v2113_v35  ;;  %v2117_v38 = vadd.f32 %v2078_v9, %v230_v36  ;;  %v311_v55 = vadd.f32 1.0, %v1799_v39 }
 0x11d   :  { %v1657_v40 = vpop.f32.mrf.mxu0  ;;  %v1801_v41 = vpop.eup %1800  ;;  %v265_v34 = vmul.f32 0.5, %v2101_v26  ;;  %v266_v36 = vmul.f32 0.5, %v2109_v32 }
 0x11e   :  { %v285_v42 = vmul.f32 0.70710677, %v2117_v38  ;;  %v2121_v43 = vadd.f32 %v1657_v40, %v2078_v9  ;;  %1814 = verf.f32 %v287_v37  ;;  %v309_v51 = vadd.f32 1.0, %v1801_v41 }
 0x11f   :  { %v1803_v44 = vpop.eup %1802  ;;  %v233_v45 = vpop.f32.mrf.mxu0  ;;  %v327_v7 = vmul.f32 %v311_v55, %v263_v56 }
 0x120   :  { %v288_v46 = vmul.f32 0.70710677, %v2121_v43  ;;  %v2125_v47 = vadd.f32 %v2078_v9, %v233_v45  ;;  %1816 = verf.f32 %v285_v42  ;;  %v312_v52 = vadd.f32 1.0, %v1803_v44  ;;  %v1792_v44 = vld [vmem:[#allocation7 + $0x28] sm:$0xff]  }
 0x121   :  { %v1805_v48 = vpop.eup %1804  ;;  %v1660_v50 = vpop.f32.mrf.mxu0  ;;  %v325_v2 = vmul.f32 %v309_v51, %v261_v58 }
 0x122   :  { %1818 = verf.f32 %v288_v46  ;;  %v286_v53 = vmul.f32 0.70710677, %v2125_v47  ;;  %v2130_v54 = vadd.f32 %v1660_v50, %v2078_v9  ;;  %v310_v60 = vadd.f32 1.0, %v1805_v48 }
 0x123   :  { %v246_v57 = vpop.f32.mrf.mxu0  ;;  %v328_v63 = vmul.f32 %v312_v52, %v264_v49  ;;  %v1807_v0 = vpop.eup %1806 }
 0x124   :  { %1820 = verf.f32 %v286_v53  ;;  %v291_v61 = vmul.f32 0.70710677, %v2130_v54  ;;  %v2137_v62 = vadd.f32 %v2078_v9, %v246_v57  ;;  %v326_v3 = vmul.f32 %v310_v60, %v262_v59  ;;  %v1793_v60 = vld [vmem:[#allocation7 + $0x20] sm:$0xff]  }
 0x125   :  { %v1661_v1 = vpop.f32.mrf.mxu0  ;;  %v1809_v4 = vpop.eup %1808  ;;  %v342_v18 = vpack.c.bf16 %v328_v63, %v327_v7  ;;  %v315_v31 = vadd.f32 1.0, %v1807_v0  ;;  %v272_v63 = vmul.f32 0.5, %v2121_v43  ;;  %v269_v7 = vmul.f32 0.5, %v2117_v38 }
 0x126   :  { %v289_v5 = vmul.f32 0.70710677, %v2137_v62  ;;  %v2141_v6 = vadd.f32 %v1661_v1, %v2078_v9  ;;  %v341_v13 = vpack.c.bf16 %v326_v3, %v325_v2  ;;  %1822 = verf.f32 %v291_v61 }
 0x127   :  { %v1811_v10 = vpop.eup %1810  ;;  %v249_v12 = vpop.f32.mrf.mxu0  ;;  %v313_v25 = vadd.f32 1.0, %v1809_v4  ;;  %v331_v52 = vmul.f32 %v315_v31, %v267_v33 }
 0x128   :  { %v292_v15 = vmul.f32 0.70710677, %v2141_v6  ;;  %v2145_v16 = vadd.f32 %v2078_v9, %v249_v12  ;;  %1824 = verf.f32 %v289_v5  ;;  %1678 = vmatprep.mubr.bf16.mxu1 %v341_v13  ;;  %v316_v27 = vadd.f32 1.0, %v1811_v10 }
 0x129   :  { %v1813_v21 = vpop.eup %1812  ;;  %v1712_v24 = vpop.f32.mrf.mxu0  ;;  %1679 = vmatmul.mubr.bf16.vlgmr.msra.gmra.mxu1 %v342_v18  ;;  %v329_v48 = vmul.f32 %v313_v25, %v265_v34  ;;  %v270_v10 = vmul.f32 0.5, %v2125_v47 }
 0x12a   :  { %1826 = verf.f32 %v292_v15  ;;  %v290_v28 = vmul.f32 0.70710677, %v2145_v16  ;;  %v2150_v30 = vadd.f32 %v1712_v24, %v2078_v9  ;;  %1727 = vmatpush3.bf16.msra.mxu1 %v2072_v8  ;;  %v314_v39 = vadd.f32 1.0, %v1813_v21  ;;  %v1794_v21 = vld [vmem:[#allocation7 + $0x18] sm:$0xff]  }
 0x12b   :  { %v919_v37 = vpop.f32.mrf.mxu0  ;;  %1728 = vmatprep.subr.bf16.mxu1 %v1791_v19  ;;  %v332_v42 = vmul.f32 %v316_v27, %v268_v22  ;;  %v1815_v45 = vpop.eup %1814  ;;  %v271_v15 = vmul.f32 0.5, %v2113_v35 }
 0x12c   :  { %1828 = verf.f32 %v290_v28  ;;  %v1000_v40 = vmul.f32 0.70710677, %v2150_v30  ;;  %v2158_v41 = vadd.f32 %v2078_v9, %v919_v37  ;;  %v330_v49 = vmul.f32 %v314_v39, %v266_v36 }
 0x12d   :  { %v1713_v46 = vpop.f32.mrf.mxu0  ;;  %v1817_v50 = vpop.eup %1816  ;;  %v344_v59 = vpack.c.bf16 %v332_v42, %v331_v52  ;;  %v319_v5 = vadd.f32 1.0, %v1815_v45  ;;  %v276_v39 = vmul.f32 0.5, %v2141_v6 }
 0x12e   :  { %v998_v51 = vmul.f32 0.70710677, %v2158_v41  ;;  %v2162_v8 = vadd.f32 %v1713_v46, %v2078_v9  ;;  %1729 = vmatpush3.bf16.msra.mxu1 %v1791_v19  ;;  %v343_v56 = vpack.c.bf16 %v330_v49, %v329_v48  ;;  %1830 = verf.f32 %v1000_v40  ;;  %v1795_v48 = vld [vmem:[#allocation7 + $0x10] sm:$0xff]  }
 0x12f   :  { %v1819_v53 = vpop.eup %1818  ;;  %v922_v55 = vpop.f32.mrf.mxu0  ;;  %1730 = vmatprep.subr.bf16.mxu1 %v1792_v44  ;;  %v317_v1 = vadd.f32 1.0, %v1817_v50  ;;  %v335_v36 = vmul.f32 %v319_v5, %v271_v15 }
 0x130   :  { %v1001_v57 = vmul.f32 0.70710677, %v2162_v8  ;;  %v2166_v58 = vadd.f32 %v2078_v9, %v922_v55  ;;  %1832 = verf.f32 %v998_v51  ;;  %1682 = vmatprep.mubr.bf16.mxu1 %v343_v56  ;;  %v320_v2 = vadd.f32 1.0, %v1819_v53 }
 0x131   :  { %v1821_v61 = vpop.eup %1820  ;;  %v1716_v0 = vpop.f32.mrf.mxu0  ;;  %1683 = vmatmul.mubr.bf16.gmra.mxu1 %v344_v59  ;;  %v333_v27 = vmul.f32 %v317_v1, %v269_v7  ;;  %v275_v55 = vmul.f32 0.5, %v2130_v54  ;;  %v273_v59 = vmul.f32 0.5, %v2137_v62 }
 0x132   :  { %1834 = verf.f32 %v1001_v57  ;;  %v999_v3 = vmul.f32 0.70710677, %v2166_v58  ;;  %v2171_v4 = vadd.f32 %v1716_v0, %v2078_v9  ;;  %1731 = vmatpush3.bf16.msra.mxu1 %v1792_v44  ;;  %v318_v13 = vadd.f32 1.0, %v1821_v61 }
 0x133   :  { %v935_v12 = vpop.f32.mrf.mxu0  ;;  %1732 = vmatprep.subr.bf16.mxu1 %v1793_v60  ;;  %v336_v19 = vmul.f32 %v320_v2, %v272_v63  ;;  %v1823_v22 = vpop.eup %1822  ;;  %v1796_v2 = vld [vmem:[#allocation7 + $0x8] sm:$0xff]  }
 0x134   :  { %1836 = verf.f32 %v999_v3  ;;  %v2177_v18 = vadd.f32 %v2078_v9, %v935_v12  ;;  %v1004_v24 = vmul.f32 0.70710677, %v2171_v4  ;;  %v334_v28 = vmul.f32 %v318_v13, %v270_v10 }
 0x135   :  { %v1717_v25 = vpop.f32.mrf.mxu0  ;;  %v1825_v31 = vpop.eup %1824  ;;  %v346_v46 = vpack.c.bf16 %v336_v19, %v335_v36  ;;  %v323_v52 = vadd.f32 1.0, %v1823_v22  ;;  %v1797_v36 = vld [vmem:[#allocation7] sm:$0xff]  }
 0x136   :  { %v1002_v33 = vmul.f32 0.70710677, %v2177_v18  ;;  %v2182_v34 = vadd.f32 %v1717_v25, %v2078_v9  ;;  %1733 = vmatpush3.bf16.msra.mxu1 %v1793_v60  ;;  %v345_v42 = vpack.c.bf16 %v334_v28, %v333_v27  ;;  %v321_v51 = vadd.f32 1.0, %v1825_v31 }
 0x137   :  { %v1827_v37 = vpop.eup %1826  ;;  %v938_v40 = vpop.f32.mrf.mxu0  ;;  %1734 = vmatprep.subr.bf16.mxu1 %v1794_v21  ;;  %v274_v60 = vmul.f32 0.5, %v2145_v16  ;;  %v339_v13 = vmul.f32 %v323_v52, %v275_v55 }
 0x138   :  { %1838 = verf.f32 %v1002_v33  ;;  %v1005_v44 = vmul.f32 0.70710677, %v2182_v34  ;;  %v2187_v45 = vadd.f32 %v2078_v9, %v938_v40  ;;  %1686 = vmatprep.mubr.bf16.mxu1 %v345_v42  ;;  %v324_v53 = vadd.f32 1.0, %v1827_v37 }
 0x139   :  { %v1829_v49 = vpop.eup %1828  ;;  %1840 = verf.f32 %v1004_v24  ;;  %v1720_v50 = vpop.f32.mrf.mxu0  ;;  %1687 = vmatmul.mubr.bf16.gmra.mxu1 %v346_v46  ;;  %v337_v10 = vmul.f32 %v321_v51, %v273_v59  ;;  %v985_v40 = vmul.f32 0.5, %v2162_v8  ;;  %v984_v46 = vmul.f32 0.5, %v2150_v30 }
 0x13a   :  { %1842 = verf.f32 %v1005_v44  ;;  %v1003_v56 = vmul.f32 0.70710677, %v2187_v45  ;;  %v2192_v57 = vadd.f32 %v1720_v50, %v2078_v9  ;;  %1735 = vmatpush3.bf16.msra.mxu1 %v1794_v21  ;;  %v322_v63 = vadd.f32 1.0, %v1829_v49 }
 0x13b   :  { %v951_v61 = vpop.f32.mrf.mxu0  ;;  %v340_v0 = vmul.f32 %v324_v53, %v276_v39  ;;  %1736 = vmatprep.subr.bf16.mxu1 %v1795_v48  ;;  %v1831_v3 = vpop.eup %1830  ;;  %v983_v51 = vmul.f32 0.5, %v2166_v58 }
 0x13c   :  { %1844 = verf.f32 %v1003_v56  ;;  %v1008_v1 = vmul.f32 0.70710677, %v2192_v57  ;;  %v2198_v5 = vadd.f32 %v2078_v9, %v951_v61  ;;  %v338_v12 = vmul.f32 %v322_v63, %v274_v60 }
 0x13d   :  { %v1721_v7 = vpop.f32.mrf.mxu0  ;;  %v1833_v15 = vpop.eup %1832  ;;  %v348_v27 = vpack.c.bf16 %v340_v0, %v339_v13  ;;  %v1032_v39 = vadd.f32 1.0, %v1831_v3  ;;  %v986_v13 = vmul.f32 0.5, %v2177_v18 }
 0x13e   :  { %v2201_v19 = vadd.f32 %v1721_v7, %v2078_v9  ;;  %v1006_v22 = vmul.f32 0.70710677, %v2198_v5  ;;  %1737 = vmatpush3.bf16.msra.mxu1 %v1795_v48  ;;  %v347_v25 = vpack.c.bf16 %v338_v12, %v337_v10  ;;  %1846 = verf.f32 %v1008_v1 }
 0x13f   :  { %v1835_v21 = vpop.eup %1834  ;;  %v954_v24 = vpop.f32.mrf.mxu0  ;;  %1738 = vmatprep.subr.bf16.mxu1 %v1796_v2  ;;  %v1030_v44 = vadd.f32 1.0, %v1833_v15  ;;  %v982_v48 = vmul.f32 0.5, %v2158_v41  ;;  %v1048_v60 = vmul.f32 %v1032_v39, %v984_v46 }
 0x140   :  { %v1033_v28 = vadd.f32 1.0, %v1835_v21  ;;  %v1009_v31 = vmul.f32 0.70710677, %v2201_v19  ;;  %v2206_v33 = vadd.f32 %v2078_v9, %v954_v24  ;;  %1848 = verf.f32 %v1006_v22  ;;  %1690 = vmatprep.mubr.bf16.mxu1 %v347_v25 }
 0x141   :  { %v1837_v37 = vpop.eup %1836  ;;  %v1724_v42 = vpop.f32.mrf.mxu0  ;;  %1691 = vmatmul.mubr.bf16.gmra.mxu1 %v348_v27  ;;  %v1046_v0 = vmul.f32 %v1030_v44, %v982_v48 }
 0x142   :  { %1850 = verf.f32 %v1009_v31  ;;  %v1007_v49 = vmul.f32 0.70710677, %v2206_v33  ;;  %v1049_v50 = vmul.f32 %v1033_v28, %v985_v40  ;;  %v2214_v52 = vadd.f32 %v1724_v42, %v2078_v9  ;;  %1739 = vmatpush3.bf16.msra.mxu1 %v1796_v2 }
 0x143   :  { %v967_v53 = vpop.f32.mrf.mxu0  ;;  %v1031_v55 = vadd.f32 1.0, %v1837_v37  ;;  %1740 = vmatprep.subr.bf16.mxu1 %v1797_v36  ;;  %v989_v28 = vmul.f32 0.5, %v2182_v34  ;;  %v987_v31 = vmul.f32 0.5, %v2187_v45  ;;  %v988_v42 = vmul.f32 0.5, %v2171_v4 }
 0x144   :  { %1852 = verf.f32 %v1007_v49  ;;  %v2217_v56 = vadd.f32 %v2078_v9, %v967_v53  ;;  %v1012_v61 = vmul.f32 0.70710677, %v2214_v52  ;;  %v1063_v12 = vpack.c.bf16 %v1049_v50, %v1048_v60 }
 0x145   :  { %v1839_v59 = vpop.eup %1838  ;;  %v1725_v63 = vpop.f32.mrf.mxu0  ;;  %v1047_v1 = vmul.f32 %v1031_v55, %v983_v51 }
 0x146   :  { %v1841_v3 = vpop.eup %1840  ;;  %v1010_v7 = vmul.f32 0.70710677, %v2217_v56  ;;  %v2222_v10 = vadd.f32 %v1725_v63, %v2078_v9  ;;  %1741 = vmatpush3.bf16.msra.mxu1 %v1797_v36  ;;  %v1034_v25 = vadd.f32 1.0, %v1839_v59  ;;  %v990_v63 = vmul.f32 0.5, %v2198_v5 }
 0x147   :  { %v1843_v2 = vpop.eup %1842  ;;  %v970_v15 = vpop.f32.mrf.mxu0  ;;  %v1062_v21 = vpack.c.bf16 %v1047_v1, %v1046_v0  ;;  %v1036_v40 = vadd.f32 1.0, %v1841_v3  ;;  %v993_v0 = vmul.f32 0.5, %v2201_v19  ;;  %v991_v1 = vmul.f32 0.5, %v2206_v33 }
 0x148   :  { %1854 = verf.f32 %v1010_v7  ;;  %v1013_v22 = vmul.f32 0.70710677, %v2222_v10  ;;  %v2227_v24 = vadd.f32 %v2078_v9, %v970_v15  ;;  %v1037_v37 = vadd.f32 1.0, %v1843_v2 }
 0x149   :  { %v1845_v27 = vpop.eup %1844  ;;  %1856 = verf.f32 %v1012_v61  ;;  %1742 = vmatprep.mubr.bf16.mxu1 %v1062_v21  ;;  %v1050_v9 = vmul.f32 %v1034_v25, %v986_v13  ;;  %v1052_v51 = vmul.f32 %v1036_v40, %v988_v42  ;;  %v992_v2 = vmul.f32 0.5, %v2192_v57 }
 0x14a   :  { %1858 = verf.f32 %v1013_v22  ;;  %v1011_v36 = vmul.f32 0.70710677, %v2227_v24  ;;  %1743 = vmatmul.mubr.bf16.vlgmr.msra.gmra.mxu1 %v1063_v12  ;;  %v1035_v39 = vadd.f32 1.0, %v1845_v27  ;;  %v1053_v46 = vmul.f32 %v1037_v37, %v989_v28 }
 0x14b   :  { %v1847_v48 = vpop.eup %1846  ;;  %v994_v40 = vmul.f32 0.5, %v2217_v56  ;;  %v997_v42 = vmul.f32 0.5, %v2222_v10 }
 0x14c   :  { %1860 = verf.f32 %v1011_v36  ;;  %v1051_v44 = vmul.f32 %v1035_v39, %v987_v31  ;;  %v1065_v55 = vpack.c.bf16 %v1053_v46, %v1052_v51  ;;  %v1040_v7 = vadd.f32 1.0, %v1847_v48 }
 0x14d   :  { %v1849_v49 = vpop.eup %1848  ;;  %v996_v48 = vmul.f32 0.5, %v2214_v52 }
 0x14e   :  { %v1064_v50 = vpack.c.bf16 %v1051_v44, %v1050_v9  ;;  %v1038_v59 = vadd.f32 1.0, %v1849_v49  ;;  %v1056_v27 = vmul.f32 %v1040_v7, %v992_v2  ;;  %v995_v9 = vmul.f32 0.5, %v2227_v24 }
 0x14f   :  { %v1851_v53 = vpop.eup %1850 }
 0x150   :  { %1746 = vmatprep.mubr.bf16.mxu1 %v1064_v50  ;;  %v1041_v60 = vadd.f32 1.0, %v1851_v53  ;;  %v1054_v12 = vmul.f32 %v1038_v59, %v990_v63 }
 0x151   :  { %v1853_v61 = vpop.eup %1852 }
 0x152   :  { %1747 = vmatmul.mubr.bf16.gmra.mxu1 %v1065_v55  ;;  %v1039_v3 = vadd.f32 1.0, %v1853_v61  ;;  %v1057_v15 = vmul.f32 %v1041_v60, %v993_v0  ;;  %v2244_v60 = vld [vmem:[%s2749_s4] ss:$0 sm:$0xff] }
 0x154   :  { %v1055_v13 = vmul.f32 %v1039_v3, %v991_v1  ;;  %v1067_v31 = vpack.c.bf16 %v1057_v15, %v1056_v27 }
 0x155   :  { %v1855_v21 = vpop.eup %1854 }
 0x156   :  { %v1857_v22 = vpop.eup %1856  ;;  %v1066_v25 = vpack.c.bf16 %v1055_v13, %v1054_v12  ;;  %v1042_v37 = vadd.f32 1.0, %v1855_v21 }
 0x157   :  { %v1859_v28 = vpop.eup %1858  ;;  %v1044_v46 = vadd.f32 1.0, %v1857_v22 }
 0x158   :  { %1750 = vmatprep.mubr.bf16.mxu1 %v1066_v25  ;;  %v1045_v36 = vadd.f32 1.0, %v1859_v28  ;;  %v1058_v49 = vmul.f32 %v1042_v37, %v994_v40 }
 0x159   :  { %v1861_v39 = vpop.eup %1860  ;;  %v1060_v55 = vmul.f32 %v1044_v46, %v996_v48 }
 0x15a   :  { %1751 = vmatmul.mubr.bf16.gmra.mxu1 %v1067_v31  ;;  %v1043_v44 = vadd.f32 1.0, %v1861_v39  ;;  %v1061_v51 = vmul.f32 %v1045_v36, %v997_v42 }
 0x15c   :  { %v1059_v50 = vmul.f32 %v1043_v44, %v995_v9  ;;  %v1069_v59 = vpack.c.bf16 %v1061_v51, %v1060_v55 }
 0x15e   :  { %v1068_v53 = vpack.c.bf16 %v1059_v50, %v1058_v49 }
 0x160   :  { %1754 = vmatprep.mubr.bf16.mxu1 %v1068_v53 }
 0x162   :  { %1755 = vmatmul.mubr.bf16.gmra.mxu1 %v1069_v59 }
 0x1e9   :  { %v1680_v61 = vpop.f32.mrf.mxu1 }
 0x1ea   :  { %v463_v63 = vadd.f32 %v1680_v61, %v2244_v60 }
 0x1eb   :  { %v454_v0 = vpop.f32.mrf.mxu1 }
 0x1ec   :  { %v455_v1 = vadd.f32 %v2244_v60, %v454_v0  ;;  %v2249_v3 = vadd.f32 %v463_v63, %v2081_v11 }
 0x1ed   :  { %v1681_v7 = vpop.f32.mrf.mxu1 }
 0x1ee   :  { %v466_v2 = vadd.f32 %v1681_v7, %v2244_v60  ;;  %537 = vadd.xlane.f32.xlu1 %v2249_v3  ;;  %v2254_v12 = vadd.f32 %v455_v1, %v2085_v14 }
 0x1ef   :  { %v457_v13 = vpop.f32.mrf.mxu1 }
 0x1f0   :  { %v458_v15 = vadd.f32 %v2244_v60, %v457_v13  ;;  %533 = vadd.xlane.f32.xlu0 %v2254_v12  ;;  %v2259_v21 = vadd.f32 %v466_v2, %v2089_v17 }
 0x1f1   :  { %v1684_v22 = vpop.f32.mrf.mxu1 }
 0x1f2   :  { %v479_v11 = vadd.f32 %v1684_v22, %v2244_v60  ;;  %539 = vadd.xlane.f32.xlu1 %v2259_v21  ;;  %v2264_v25 = vadd.f32 %v458_v15, %v2093_v20 }
 0x1f3   :  { %v470_v27 = vpop.f32.mrf.mxu1 }
 0x1f4   :  { %535 = vadd.xlane.f32.xlu0 %v2264_v25  ;;  %v471_v28 = vadd.f32 %v2244_v60, %v470_v27  ;;  %v2270_v37 = vadd.f32 %v479_v11, %v2097_v23 }
 0x1f5   :  { %v1685_v14 = vpop.f32.mrf.mxu1 }
 0x1f6   :  { %v482_v31 = vadd.f32 %v1685_v14, %v2244_v60  ;;  %v2280_v42 = vadd.f32 %v471_v28, %v2101_v26 }
 0x1f7   :  { %v473_v17 = vpop.f32.mrf.mxu1 }
 0x1f8   :  { %v474_v36 = vadd.f32 %v2244_v60, %v473_v17  ;;  %545 = vadd.xlane.f32.xlu0 %v2270_v37  ;;  %v2275_v39 = vadd.f32 %v482_v31, %v2105_v29 }
 0x1f9   :  { %v1688_v20 = vpop.f32.mrf.mxu1 }
 0x1fa   :  { %v495_v40 = vadd.f32 %v1688_v20, %v2244_v60  ;;  %547 = vadd.xlane.f32.xlu1 %v2275_v39  ;;  %v2284_v23 = vadd.f32 %v474_v36, %v2109_v32 }
 0x1fb   :  { %v486_v9 = vpop.f32.mrf.mxu1 }
 0x1fc   :  { %541 = vadd.xlane.f32.xlu0 %v2280_v42  ;;  %v487_v46 = vadd.f32 %v2244_v60, %v486_v9  ;;  %v2290_v48 = vadd.f32 %v495_v40, %v2113_v35 }
 0x1fd   :  { %v1689_v44 = vpop.f32.mrf.mxu1 }
 0x1fe   :  { %v498_v29 = vadd.f32 %v1689_v44, %v2244_v60  ;;  %543 = vadd.xlane.f32.xlu1 %v2284_v23  ;;  %v2300_v53 = vadd.f32 %v487_v46, %v2117_v38 }
 0x1ff   :  { %v489_v49 = vpop.f32.mrf.mxu1 }
 0x200   :  { %v490_v26 = vadd.f32 %v2244_v60, %v489_v49  ;;  %553 = vadd.xlane.f32.xlu0 %v2290_v48  ;;  %v2295_v50 = vadd.f32 %v498_v29, %v2121_v43 }
 0x201   :  { %v1692_v32 = vpop.f32.mrf.mxu1 }
 0x202   :  { %v511_v51 = vadd.f32 %v1692_v32, %v2244_v60  ;;  %555 = vadd.xlane.f32.xlu1 %v2295_v50  ;;  %v2304_v35 = vadd.f32 %v490_v26, %v2125_v47 }
 0x203   :  { %v502_v55 = vpop.f32.mrf.mxu1 }
 0x204   :  { %549 = vadd.xlane.f32.xlu0 %v2300_v53  ;;  %v503_v61 = vadd.f32 %v2244_v60, %v502_v55  ;;  %v2310_v63 = vadd.f32 %v511_v51, %v2130_v54 }
 0x205   :  { %v1693_v59 = vpop.f32.mrf.mxu1 }
 0x206   :  { %v514_v43 = vadd.f32 %v1693_v59, %v2244_v60  ;;  %551 = vadd.xlane.f32.xlu1 %v2304_v35  ;;  %v2320_v2 = vadd.f32 %v503_v61, %v2137_v62 }
 0x207   :  { %v505_v0 = vpop.f32.mrf.mxu1 }
 0x208   :  { %v506_v38 = vadd.f32 %v2244_v60, %v505_v0  ;;  %561 = vadd.xlane.f32.xlu0 %v2310_v63  ;;  %v2315_v1 = vadd.f32 %v514_v43, %v2141_v6 }
 0x20a   :  { %v1744_v47 = vpop.f32.mrf.mxu1  ;;  %563 = vadd.xlane.f32.xlu1 %v2315_v1  ;;  %v2324_v54 = vadd.f32 %v506_v38, %v2145_v16 }
 0x20b   :  { %v1184_v7 = vadd.f32 %v1744_v47, %v2244_v60 }
 0x20c   :  { %v1175_v13 = vpop.f32.mrf.mxu1  ;;  %557 = vadd.xlane.f32.xlu0 %v2320_v2 }
 0x20d   :  { %v1176_v22 = vadd.f32 %v2244_v60, %v1175_v13  ;;  %v2330_v11 = vadd.f32 %v1184_v7, %v2150_v30 }
 0x20e   :  { %v1745_v15 = vpop.f32.mrf.mxu1  ;;  %559 = vadd.xlane.f32.xlu1 %v2324_v54 }
 0x20f   :  { %v1187_v6 = vadd.f32 %v1745_v15, %v2244_v60  ;;  %v2340_v31 = vadd.f32 %v1176_v22, %v2158_v41  ;;  %v597_v22 = vlaneseq }
 0x210   :  { %v1178_v27 = vpop.f32.mrf.mxu1  ;;  %1258 = vadd.xlane.f32.xlu0 %v2330_v11 }
 0x211   :  { %v1179_v62 = vadd.f32 %v2244_v60, %v1178_v27  ;;  %v2335_v14 = vadd.f32 %v1187_v6, %v2162_v8  ;;  %v2406_v6 = vand.u32 127, %v597_v22 }
 0x212   :  { %v1748_v16 = vpop.f32.mrf.mxu1 }
 0x213   :  { %v1200_v28 = vadd.f32 %v1748_v16, %v2244_v60  ;;  %1260 = vadd.xlane.f32.xlu1 %v2335_v14  ;;  %v2344_v30 = vadd.f32 %v1179_v62, %v2166_v58  ;;  %vm599_vm0 = vcmp.lt.s32.totalorder %v2406_v6, 64 }
 0x214   :  { %v1191_v17 = vpop.f32.mrf.mxu1  ;;  %1254 = vadd.xlane.f32.xlu0 %v2340_v31 }
 0x215   :  { %v1192_v20 = vadd.f32 %v2244_v60, %v1191_v17  ;;  %v2350_v40 = vadd.f32 %v1200_v28, %v2171_v4 }
 0x216   :  { %v1749_v36 = vpop.f32.mrf.mxu1 }
 0x217   :  { %v1203_v8 = vadd.f32 %v1749_v36, %v2244_v60  ;;  %1256 = vadd.xlane.f32.xlu1 %v2344_v30  ;;  %v2360_v29 = vadd.f32 %v1192_v20, %v2177_v18 }
 0x218   :  { %v1194_v9 = vpop.f32.mrf.mxu1  ;;  %1266 = vadd.xlane.f32.xlu0 %v2350_v40 }
 0x219   :  { %v1195_v41 = vadd.f32 %v2244_v60, %v1194_v9  ;;  %v2355_v44 = vadd.f32 %v1203_v8, %v2182_v34 }
 0x21a   :  { %v1752_v58 = vpop.f32.mrf.mxu1 }
 0x21b   :  { %v1216_v46 = vadd.f32 %v1752_v58, %v2244_v60  ;;  %1268 = vadd.xlane.f32.xlu1 %v2355_v44  ;;  %v2364_v4 = vadd.f32 %v1195_v41, %v2187_v45 }
 0x21c   :  { %v1207_v49 = vpop.f32.mrf.mxu1  ;;  %1262 = vadd.xlane.f32.xlu0 %v2360_v29 }
 0x21d   :  { %v1208_v32 = vadd.f32 %v2244_v60, %v1207_v49  ;;  %v2370_v51 = vadd.f32 %v1216_v46, %v2192_v57 }
 0x21e   :  { %v1753_v26 = vpop.f32.mrf.mxu1 }
 0x21f   :  { %v1219_v34 = vadd.f32 %v1753_v26, %v2244_v60  ;;  %1264 = vadd.xlane.f32.xlu1 %v2364_v4  ;;  %v2379_v61 = vadd.f32 %v1208_v32, %v2198_v5 }
 0x220   :  { %v1210_v55 = vpop.f32.mrf.mxu1  ;;  %1274 = vadd.xlane.f32.xlu0 %v2370_v51 }
 0x221   :  { %v1211_v18 = vadd.f32 %v2244_v60, %v1210_v55  ;;  %v2375_v59 = vadd.f32 %v1219_v34, %v2201_v19 }
 0x222   :  { %v1756_v45 = vpop.f32.mrf.mxu1 }
 0x223   :  { %1276 = vadd.xlane.f32.xlu1 %v2375_v59  ;;  %v2384_v57 = vadd.f32 %v1211_v18, %v2206_v33  ;;  %v1232_v47 = vadd.f32 %v1756_v45, %v2244_v60 }
 0x224   :  { %v1223_v43 = vpop.f32.mrf.mxu1  ;;  %1270 = vadd.xlane.f32.xlu0 %v2379_v61 }
 0x225   :  { %v1224_v0 = vadd.f32 %v2244_v60, %v1223_v43  ;;  %v2398_v33 = vadd.f32 %v1232_v47, %v2214_v52 }
 0x226   :  { %v1757_v38 = vpop.f32.mrf.mxu1 }
 0x227   :  { %1272 = vadd.xlane.f32.xlu1 %v2384_v57  ;;  %v2389_v19 = vadd.f32 %v1224_v0, %v2217_v56  ;;  %v1235_v13 = vadd.f32 %v1757_v38, %v2244_v60 }
 0x228   :  { %v1226_v7 = vpop.f32.mrf.mxu1 }
 0x229   :  { %v1227_v5 = vadd.f32 %v2244_v60, %v1226_v7  ;;  %1278 = vadd.xlane.f32.xlu0 %v2389_v19  ;;  %v2403_v56 = vadd.f32 %v1235_v13, %v2222_v10 }
 0x22b   :  { %v2395_v15 = vadd.f32 %v1227_v5, %v2227_v24 }
 0x22d   :  { %1280 = vadd.xlane.f32.xlu1 %v2395_v15  ;;  %1282 = vadd.xlane.f32.xlu0 %v2398_v33 }
 0x231   :  { %1284 = vadd.xlane.f32.xlu1 %v2403_v56 }
 0x277   :  { %v538_v27 = vpop.xlane.xlu1 %537 }
 0x278   :  { %v567_v60 = vmul.f32 0.015625, %v538_v27 }
 0x279   :  { %v534_v62 = vpop.xlane.xlu0 %533 }
 0x27a   :  { %v583_v52 = vsub.f32 %v2249_v3, %v567_v60  ;;  %v565_v24 = vmul.f32 0.015625, %v534_v62 }
 0x27b   :  { %v540_v16 = vpop.xlane.xlu1 %539 }
 0x27c   :  { %v581_v28 = vsub.f32 %v2254_v12, %v565_v24  ;;  %v568_v17 = vmul.f32 0.015625, %v540_v16  ;;  %v2413_v10 = vsel %vm599_vm0, %v583_v52, 0.0 }
 0x27d   :  { %v536_v36 = vpop.xlane.xlu0 %535  ;;  %v618_v20 = vmul.f32 %v2413_v10, %v2413_v10 }
 0x27e   :  { %v584_v8 = vsub.f32 %v2259_v21, %v568_v17  ;;  %v566_v9 = vmul.f32 0.015625, %v536_v36  ;;  %v2420_v41 = vsel %vm599_vm0, %v581_v28, 0.0 }
 0x27f   :  { %636 = vadd.xlane.f32.xlu0 %v618_v20  ;;  %v616_v49 = vmul.f32 %v2420_v41, %v2420_v41 }
 0x280   :  { %v582_v3 = vsub.f32 %v2264_v25, %v566_v9  ;;  %v2425_v12 = vsel %vm599_vm0, %v584_v8, 0.0 }
 0x281   :  { %v546_v58 = vpop.xlane.xlu0 %545  ;;  %v619_v46 = vmul.f32 %v2425_v12, %v2425_v12 }
 0x282   :  { %v571_v21 = vmul.f32 0.015625, %v546_v58  ;;  %v2433_v26 = vsel %vm599_vm0, %v582_v3, 0.0 }
 0x283   :  { %v548_v32 = vpop.xlane.xlu1 %547  ;;  %638 = vadd.xlane.f32.xlu1 %v619_v46  ;;  %632 = vadd.xlane.f32.xlu0 %v616_v49  ;;  %v617_v18 = vmul.f32 %v2433_v26, %v2433_v26 }
 0x284   :  { %v587_v25 = vsub.f32 %v2270_v37, %v571_v21  ;;  %v572_v34 = vmul.f32 0.015625, %v548_v32 }
 0x285   :  { %v542_v55 = vpop.xlane.xlu0 %541 }
 0x286   :  { %v588_v45 = vsub.f32 %v2275_v39, %v572_v34  ;;  %v569_v43 = vmul.f32 0.015625, %v542_v55  ;;  %v2441_v0 = vsel %vm599_vm0, %v587_v25, 0.0 }
 0x287   :  { %v544_v38 = vpop.xlane.xlu1 %543  ;;  %634 = vadd.xlane.f32.xlu1 %v617_v18  ;;  %v622_v47 = vmul.f32 %v2441_v0, %v2441_v0 }
 0x288   :  { %v585_v7 = vsub.f32 %v2280_v42, %v569_v43  ;;  %v570_v37 = vmul.f32 0.015625, %v544_v38  ;;  %v2448_v5 = vsel %vm599_vm0, %v588_v45, 0.0 }
 0x289   :  { %644 = vadd.xlane.f32.xlu0 %v622_v47  ;;  %v554_v13 = vpop.xlane.xlu0 %553  ;;  %v623_v39 = vmul.f32 %v2448_v5, %v2448_v5 }
 0x28a   :  { %v586_v22 = vsub.f32 %v2284_v23, %v570_v37  ;;  %v575_v27 = vmul.f32 0.015625, %v554_v13  ;;  %v2455_v60 = vsel %vm599_vm0, %v585_v7, 0.0 }
 0x28b   :  { %v556_v62 = vpop.xlane.xlu1 %555  ;;  %646 = vadd.xlane.f32.xlu1 %v623_v39  ;;  %v620_v42 = vmul.f32 %v2455_v60, %v2455_v60 }
 0x28c   :  { %v591_v52 = vsub.f32 %v2290_v48, %v575_v27  ;;  %v576_v24 = vmul.f32 0.015625, %v556_v62  ;;  %v2462_v16 = vsel %vm599_vm0, %v586_v22, 0.0 }
 0x28d   :  { %640 = vadd.xlane.f32.xlu0 %v620_v42  ;;  %v550_v28 = vpop.xlane.xlu0 %549  ;;  %v621_v23 = vmul.f32 %v2462_v16, %v2462_v16 }
 0x28e   :  { %v592_v17 = vsub.f32 %v2295_v50, %v576_v24  ;;  %v573_v36 = vmul.f32 0.015625, %v550_v28  ;;  %v2469_v20 = vsel %vm599_vm0, %v591_v52, 0.0 }
 0x28f   :  { %v552_v8 = vpop.xlane.xlu1 %551  ;;  %642 = vadd.xlane.f32.xlu1 %v621_v23  ;;  %v626_v48 = vmul.f32 %v2469_v20, %v2469_v20 }
 0x290   :  { %v589_v9 = vsub.f32 %v2300_v53, %v573_v36  ;;  %v574_v3 = vmul.f32 0.015625, %v552_v8  ;;  %v2476_v58 = vsel %vm599_vm0, %v592_v17, 0.0 }
 0x291   :  { %652 = vadd.xlane.f32.xlu0 %v626_v48  ;;  %v562_v46 = vpop.xlane.xlu0 %561  ;;  %v627_v50 = vmul.f32 %v2476_v58, %v2476_v58 }
 0x292   :  { %v590_v49 = vsub.f32 %v2304_v35, %v574_v3  ;;  %v579_v21 = vmul.f32 0.015625, %v562_v46  ;;  %v2483_v32 = vsel %vm599_vm0, %v589_v9, 0.0 }
 0x293   :  { %v564_v25 = vpop.xlane.xlu1 %563  ;;  %654 = vadd.xlane.f32.xlu1 %v627_v50  ;;  %v624_v53 = vmul.f32 %v2483_v32, %v2483_v32 }
 0x294   :  { %v595_v34 = vsub.f32 %v2310_v63, %v579_v21  ;;  %v580_v55 = vmul.f32 0.015625, %v564_v25  ;;  %v2490_v18 = vsel %vm599_vm0, %v590_v49, 0.0 }
 0x295   :  { %648 = vadd.xlane.f32.xlu0 %v624_v53  ;;  %v558_v45 = vpop.xlane.xlu0 %557  ;;  %v625_v35 = vmul.f32 %v2490_v18, %v2490_v18 }
 0x296   :  { %v596_v43 = vsub.f32 %v2315_v1, %v580_v55  ;;  %v577_v38 = vmul.f32 0.015625, %v558_v45  ;;  %v2497_v47 = vsel %vm599_vm0, %v595_v34, 0.0 }
 0x297   :  { %v560_v7 = vpop.xlane.xlu1 %559  ;;  %650 = vadd.xlane.f32.xlu1 %v625_v35  ;;  %v630_v63 = vmul.f32 %v2497_v47, %v2497_v47 }
 0x298   :  { %v593_v37 = vsub.f32 %v2320_v2, %v577_v38  ;;  %v578_v13 = vmul.f32 0.015625, %v560_v7  ;;  %v2504_v39 = vsel %vm599_vm0, %v596_v43, 0.0 }
 0x299   :  { %660 = vadd.xlane.f32.xlu0 %v630_v63  ;;  %v1259_v22 = vpop.xlane.xlu0 %1258  ;;  %v631_v1 = vmul.f32 %v2504_v39, %v2504_v39 }
 0x29a   :  { %v594_v27 = vsub.f32 %v2324_v54, %v578_v13  ;;  %v1288_v62 = vmul.f32 0.015625, %v1259_v22  ;;  %v2511_v42 = vsel %vm599_vm0, %v593_v37, 0.0 }
 0x29b   :  { %662 = vadd.xlane.f32.xlu1 %v631_v1  ;;  %v628_v2 = vmul.f32 %v2511_v42, %v2511_v42 }
 0x29c   :  { %v1261_v52 = vpop.xlane.xlu1 %1260  ;;  %v1304_v24 = vsub.f32 %v2330_v11, %v1288_v62  ;;  %v2518_v23 = vsel %vm599_vm0, %v594_v27, 0.0 }
 0x29d   :  { %v1289_v28 = vmul.f32 0.015625, %v1261_v52  ;;  %656 = vadd.xlane.f32.xlu0 %v628_v2  ;;  %v1255_v17 = vpop.xlane.xlu0 %1254  ;;  %v629_v54 = vmul.f32 %v2518_v23, %v2518_v23 }
 0x29e   :  { %v1286_v8 = vmul.f32 0.015625, %v1255_v17  ;;  %v2525_v48 = vsel %vm599_vm0, %v1304_v24, 0.0 }
 0x29f   :  { %v1305_v36 = vsub.f32 %v2335_v14, %v1289_v28  ;;  %658 = vadd.xlane.f32.xlu1 %v629_v54  ;;  %v1336_v11 = vmul.f32 %v2525_v48, %v2525_v48 }
 0x2a0   :  { %v1257_v9 = vpop.xlane.xlu1 %1256  ;;  %v1302_v3 = vsub.f32 %v2340_v31, %v1286_v8 }
 0x2a1   :  { %v1287_v46 = vmul.f32 0.015625, %v1257_v9  ;;  %v2532_v50 = vsel %vm599_vm0, %v1305_v36, 0.0  ;;  %1354 = vadd.xlane.f32.xlu0 %v1336_v11  ;;  %v1267_v49 = vpop.xlane.xlu0 %1266 }
 0x2a2   :  { %v1337_v14 = vmul.f32 %v2532_v50, %v2532_v50  ;;  %v1292_v25 = vmul.f32 0.015625, %v1267_v49  ;;  %v2539_v53 = vsel %vm599_vm0, %v1302_v3, 0.0 }
 0x2a3   :  { %v1303_v21 = vsub.f32 %v2344_v30, %v1287_v46  ;;  %v1334_v31 = vmul.f32 %v2539_v53, %v2539_v53 }
 0x2a4   :  { %v1269_v34 = vpop.xlane.xlu1 %1268  ;;  %1356 = vadd.xlane.f32.xlu1 %v1337_v14  ;;  %v1308_v55 = vsub.f32 %v2350_v40, %v1292_v25 }
 0x2a5   :  { %v1293_v45 = vmul.f32 0.015625, %v1269_v34  ;;  %v2546_v35 = vsel %vm599_vm0, %v1303_v21, 0.0  ;;  %1350 = vadd.xlane.f32.xlu0 %v1334_v31  ;;  %v1263_v43 = vpop.xlane.xlu0 %1262 }
 0x2a6   :  { %v1335_v30 = vmul.f32 %v2546_v35, %v2546_v35  ;;  %v1290_v7 = vmul.f32 0.015625, %v1263_v43  ;;  %v2553_v63 = vsel %vm599_vm0, %v1308_v55, 0.0 }
 0x2a7   :  { %v1309_v38 = vsub.f32 %v2355_v44, %v1293_v45  ;;  %v1340_v40 = vmul.f32 %v2553_v63, %v2553_v63 }
 0x2a8   :  { %v1265_v37 = vpop.xlane.xlu1 %1264  ;;  %1352 = vadd.xlane.f32.xlu1 %v1335_v30  ;;  %v1306_v13 = vsub.f32 %v2360_v29, %v1290_v7 }
 0x2a9   :  { %v1291_v22 = vmul.f32 0.015625, %v1265_v37  ;;  %v2560_v1 = vsel %vm599_vm0, %v1309_v38, 0.0  ;;  %1362 = vadd.xlane.f32.xlu0 %v1340_v40  ;;  %v1275_v27 = vpop.xlane.xlu0 %1274 }
 0x2aa   :  { %v1341_v44 = vmul.f32 %v2560_v1, %v2560_v1  ;;  %v1296_v52 = vmul.f32 0.015625, %v1275_v27  ;;  %v2567_v2 = vsel %vm599_vm0, %v1306_v13, 0.0 }
 0x2ab   :  { %v1307_v62 = vsub.f32 %v2364_v4, %v1291_v22  ;;  %v1338_v29 = vmul.f32 %v2567_v2, %v2567_v2 }
 0x2ac   :  { %v1277_v24 = vpop.xlane.xlu1 %1276  ;;  %1364 = vadd.xlane.f32.xlu1 %v1341_v44  ;;  %v1312_v28 = vsub.f32 %v2370_v51, %v1296_v52 }
 0x2ad   :  { %v1297_v17 = vmul.f32 0.015625, %v1277_v24  ;;  %v2574_v54 = vsel %vm599_vm0, %v1307_v62, 0.0  ;;  %1358 = vadd.xlane.f32.xlu0 %v1338_v29  ;;  %v1271_v36 = vpop.xlane.xlu0 %1270 }
 0x2ae   :  { %v1339_v4 = vmul.f32 %v2574_v54, %v2574_v54  ;;  %v1294_v9 = vmul.f32 0.015625, %v1271_v36  ;;  %v2581_v11 = vsel %vm599_vm0, %v1312_v28, 0.0 }
 0x2af   :  { %v1313_v8 = vsub.f32 %v2375_v59, %v1297_v17  ;;  %v1344_v51 = vmul.f32 %v2581_v11, %v2581_v11 }
 0x2b0   :  { %v1273_v3 = vpop.xlane.xlu1 %1272  ;;  %1360 = vadd.xlane.f32.xlu1 %v1339_v4  ;;  %v1310_v46 = vsub.f32 %v2379_v61, %v1294_v9 }
 0x2b1   :  { %v1295_v49 = vmul.f32 0.015625, %v1273_v3  ;;  %v2588_v14 = vsel %vm599_vm0, %v1313_v8, 0.0  ;;  %1370 = vadd.xlane.f32.xlu0 %v1344_v51 }
 0x2b2   :  { %v1279_v21 = vpop.xlane.xlu0 %1278  ;;  %v1345_v59 = vmul.f32 %v2588_v14, %v2588_v14  ;;  %v2595_v31 = vsel %vm599_vm0, %v1310_v46, 0.0 }
 0x2b3   :  { %v1311_v25 = vsub.f32 %v2384_v57, %v1295_v49  ;;  %v1298_v34 = vmul.f32 0.015625, %v1279_v21  ;;  %v1342_v61 = vmul.f32 %v2595_v31, %v2595_v31 }
 0x2b4   :  { %1372 = vadd.xlane.f32.xlu1 %v1345_v59 }
 0x2b5   :  { %v1314_v55 = vsub.f32 %v2389_v19, %v1298_v34  ;;  %v2602_v45 = vsel %vm599_vm0, %v1311_v25, 0.0  ;;  %1366 = vadd.xlane.f32.xlu0 %v1342_v61 }
 0x2b6   :  { %v1281_v43 = vpop.xlane.xlu1 %1280  ;;  %v1283_v30 = vpop.xlane.xlu0 %1282  ;;  %v1343_v57 = vmul.f32 %v2602_v45, %v2602_v45 }
 0x2b7   :  { %v1299_v38 = vmul.f32 0.015625, %v1281_v43  ;;  %v1300_v7 = vmul.f32 0.015625, %v1283_v30  ;;  %v2608_v37 = vsel %vm599_vm0, %v1314_v55, 0.0 }
 0x2b8   :  { %1368 = vadd.xlane.f32.xlu1 %v1343_v57  ;;  %v1346_v19 = vmul.f32 %v2608_v37, %v2608_v37 }
 0x2b9   :  { %v1315_v40 = vsub.f32 %v2395_v15, %v1299_v38  ;;  %v1316_v13 = vsub.f32 %v2398_v33, %v1300_v7 }
 0x2ba   :  { %v1285_v22 = vpop.xlane.xlu1 %1284  ;;  %1374 = vadd.xlane.f32.xlu0 %v1346_v19 }
 0x2bb   :  { %v1301_v27 = vmul.f32 0.015625, %v1285_v22  ;;  %v2616_v44 = vsel %vm599_vm0, %v1315_v40, 0.0  ;;  %v2620_v62 = vsel %vm599_vm0, %v1316_v13, 0.0  ;;  %v2636_v40 = vld [vmem:[%s2750_s5] ss:$0 sm:$0xff]  ;;  %s2019_s5 = smov [#allocation8]  }
 0x2bc   :  { %v1347_v52 = vmul.f32 %v2616_v44, %v2616_v44  ;;  %v1348_v24 = vmul.f32 %v2620_v62, %v2620_v62 }
 0x2bd   :  { %v1317_v15 = vsub.f32 %v2403_v56, %v1301_v27 }
 0x2be   :  { %1376 = vadd.xlane.f32.xlu1 %v1347_v52  ;;  %1378 = vadd.xlane.f32.xlu0 %v1348_v24  ;;  %v2642_v24 = vld [vmem:[%s2751_s6] ss:$0 sm:$0xff]  ;;  %s1513_s6 = sshll.u32 %s2019_s5, 4  ;;  %s1514_s6 = int_to_ptr.vmem [resolvable:$true] %s1513_s6 }
 0x2bf   :  { %v2629_v33 = vsel %vm599_vm0, %v1317_v15, 0.0  ;;  %s1986_s23 = scalar_lea.vmem %s1514_s6, 4096  ;;  %p1991_p2 = scmp.lt.s32.totalorder %s1514_s6, %s1514_s6 }
 0x2c0   :  { %v1349_v29 = vmul.f32 %v2629_v33, %v2629_v33  ;;  %p1987_p1 = scmp.ne.s32.totalorder %s1514_s6, %s1986_s23  ;;  %p1992_p3 = scmp.lt.s32.totalorder %s1986_s23, %s1986_s23 }
 0x2c2   :  { %1380 = vadd.xlane.f32.xlu1 %v1349_v29  ;;  %p1993_p4 = por %p1992_p3, %p1991_p2 }
 0x2c4   :  { %p1994_p5 = pnand %p1993_p4, %p1987_p1 }
 0x308   :  { %v637_v28 = vpop.xlane.xlu0 %636 }
 0x309   :  { %v666_v17 = vmul.f32 0.015625, %v637_v28 }
 0x30b   :  { %v682_v36 = vadd.f32 1e-05, %v666_v17 }
 0x30c   :  { %v639_v4 = vpop.xlane.xlu1 %638  ;;  %v633_v8 = vpop.xlane.xlu0 %632 }
 0x30d   :  { %1862 = vrsqrt.f32 %v682_v36  ;;  %v667_v9 = vmul.f32 0.015625, %v639_v4  ;;  %v664_v3 = vmul.f32 0.015625, %v633_v8 }
 0x30f   :  { %v683_v51 = vadd.f32 1e-05, %v667_v9  ;;  %v680_v56 = vadd.f32 1e-05, %v664_v3 }
 0x310   :  { %v635_v46 = vpop.xlane.xlu1 %634 }
 0x311   :  { %1864 = vrsqrt.f32 %v683_v51  ;;  %v665_v49 = vmul.f32 0.015625, %v635_v46 }
 0x312   :  { %1866 = vrsqrt.f32 %v680_v56  ;;  %v645_v6 = vpop.xlane.xlu0 %644 }
 0x313   :  { %v681_v21 = vadd.f32 1e-05, %v665_v49  ;;  %v670_v59 = vmul.f32 0.015625, %v645_v6 }
 0x314   :  { %v647_v25 = vpop.xlane.xlu1 %646 }
 0x315   :  { %1868 = vrsqrt.f32 %v681_v21  ;;  %v686_v34 = vadd.f32 1e-05, %v670_v59  ;;  %v671_v61 = vmul.f32 0.015625, %v647_v25 }
 0x316   :  { %v641_v55 = vpop.xlane.xlu0 %640 }
 0x317   :  { %1870 = vrsqrt.f32 %v686_v34  ;;  %v687_v43 = vadd.f32 1e-05, %v671_v61  ;;  %v668_v30 = vmul.f32 0.015625, %v641_v55 }
 0x318   :  { %v643_v57 = vpop.xlane.xlu1 %642 }
 0x319   :  { %1872 = vrsqrt.f32 %v687_v43  ;;  %v684_v38 = vadd.f32 1e-05, %v668_v30  ;;  %v669_v7 = vmul.f32 0.015625, %v643_v57 }
 0x31a   :  { %v1863_v19 = vpop.eup %1862  ;;  %v653_v13 = vpop.xlane.xlu0 %652 }
 0x31b   :  { %v714_v22 = vmul.f32 %v1863_v19, %v2413_v10  ;;  %1874 = vrsqrt.f32 %v684_v38  ;;  %v685_v27 = vadd.f32 1e-05, %v669_v7  ;;  %v674_v52 = vmul.f32 0.015625, %v653_v13 }
 0x31c   :  { %v655_v15 = vpop.xlane.xlu1 %654 }
 0x31d   :  { %v737_v29 = vmul.f32 %v2636_v40, %v714_v22  ;;  %1876 = vrsqrt.f32 %v685_v27  ;;  %v690_v28 = vadd.f32 1e-05, %v674_v52  ;;  %v675_v17 = vmul.f32 0.015625, %v655_v15 }
 0x31e   :  { %v1865_v36 = vpop.eup %1864  ;;  %v649_v4 = vpop.xlane.xlu0 %648 }
 0x31f   :  { %v1867_v8 = vpop.eup %1866  ;;  %v760_v9 = vadd.f32 %v2642_v24, %v737_v29  ;;  %v715_v10 = vmul.f32 %v1865_v36, %v2425_v12  ;;  %1878 = vrsqrt.f32 %v690_v28  ;;  %v691_v3 = vadd.f32 1e-05, %v675_v17 }
 0x320   :  { %v712_v51 = vmul.f32 %v1867_v8, %v2420_v41  ;;  %v672_v56 = vmul.f32 0.015625, %v649_v4  ;;  %v651_v46 = vpop.xlane.xlu1 %650 }
 0x321   :  { %776 = vst [vmem:[#allocation8 + $0x10] sm:$0xff] %v760_v9  ;;  %v738_v49 = vmul.f32 %v2636_v40, %v715_v10  ;;  %1880 = vrsqrt.f32 %v691_v3  ;;  %v673_v6 = vmul.f32 0.015625, %v651_v46 }
 0x322   :  { %v1869_v21 = vpop.eup %1868  ;;  %v735_v59 = vmul.f32 %v2636_v40, %v712_v51  ;;  %v688_v25 = vadd.f32 1e-05, %v672_v56  ;;  %v661_v34 = vpop.xlane.xlu0 %660 }
 0x323   :  { %v761_v61 = vadd.f32 %v2642_v24, %v738_v49  ;;  %v713_v12 = vmul.f32 %v1869_v21, %v2433_v26  ;;  %v689_v55 = vadd.f32 1e-05, %v673_v6  ;;  %v678_v43 = vmul.f32 0.015625, %v661_v34 }
 0x324   :  { %v1871_v30 = vpop.eup %1870  ;;  %v758_v41 = vadd.f32 %v2642_v24, %v735_v59  ;;  %1882 = vrsqrt.f32 %v688_v25  ;;  %v663_v57 = vpop.xlane.xlu1 %662 }
 0x325   :  { %777 = vst [vmem:[#allocation8 + $0x18] sm:$0xff] %v761_v61  ;;  %v736_v38 = vmul.f32 %v2636_v40, %v713_v12  ;;  %v718_v7 = vmul.f32 %v1871_v30, %v2441_v0  ;;  %1884 = vrsqrt.f32 %v689_v55  ;;  %v694_v19 = vadd.f32 1e-05, %v678_v43 }
 0x326   :  { %v1873_v13 = vpop.eup %1872  ;;  %774 = vst [vmem:[#allocation8] sm:$0xff] %v758_v41  ;;  %v679_v22 = vmul.f32 0.015625, %v663_v57  ;;  %v657_v27 = vpop.xlane.xlu0 %656 }
 0x327   :  { %v759_v26 = vadd.f32 %v2642_v24, %v736_v38  ;;  %v741_v52 = vmul.f32 %v2636_v40, %v718_v7  ;;  %v719_v15 = vmul.f32 %v1873_v13, %v2448_v5  ;;  %1886 = vrsqrt.f32 %v694_v19 }
 0x328   :  { %v1875_v29 = vpop.eup %1874  ;;  %v695_v28 = vadd.f32 1e-05, %v679_v22  ;;  %v676_v17 = vmul.f32 0.015625, %v657_v27  ;;  %v659_v36 = vpop.xlane.xlu1 %658 }
 0x329   :  { %775 = vst [vmem:[#allocation8 + $0x8] sm:$0xff] %v759_v26  ;;  %v764_v0 = vadd.f32 %v2642_v24, %v741_v52  ;;  %v742_v4 = vmul.f32 %v2636_v40, %v719_v15  ;;  %v716_v8 = vmul.f32 %v1875_v29, %v2455_v60  ;;  %v677_v9 = vmul.f32 0.015625, %v659_v36 }
 0x32a   :  { %v1877_v10 = vpop.eup %1876  ;;  %1888 = vrsqrt.f32 %v695_v28  ;;  %v692_v3 = vadd.f32 1e-05, %v676_v17  ;;  %v1355_v51 = vpop.xlane.xlu0 %1354 }
 0x32b   :  { %780 = vst [vmem:[#allocation8 + $0x30] sm:$0xff] %v764_v0  ;;  %v765_v5 = vadd.f32 %v2642_v24, %v742_v4  ;;  %v739_v56 = vmul.f32 %v2636_v40, %v716_v8  ;;  %v717_v46 = vmul.f32 %v1877_v10, %v2462_v16  ;;  %v693_v49 = vadd.f32 1e-05, %v677_v9 }
 0x32c   :  { %v1879_v6 = vpop.eup %1878  ;;  %1890 = vrsqrt.f32 %v692_v3  ;;  %v1384_v21 = vmul.f32 0.015625, %v1355_v51 }
 0x32d   :  { %v1357_v59 = vpop.xlane.xlu1 %1356  ;;  %781 = vst [vmem:[#allocation8 + $0x38] sm:$0xff] %v765_v5  ;;  %v762_v60 = vadd.f32 %v2642_v24, %v739_v56  ;;  %v740_v25 = vmul.f32 %v2636_v40, %v717_v46  ;;  %v722_v34 = vmul.f32 %v1879_v6, %v2469_v20  ;;  %1892 = vrsqrt.f32 %v693_v49 }
 0x32e   :  { %v1881_v61 = vpop.eup %1880  ;;  %v1400_v12 = vadd.f32 1e-05, %v1384_v21  ;;  %v1385_v55 = vmul.f32 0.015625, %v1357_v59  ;;  %v1351_v43 = vpop.xlane.xlu0 %1350 }
 0x32f   :  { %778 = vst [vmem:[#allocation8 + $0x20] sm:$0xff] %v762_v60  ;;  %v763_v16 = vadd.f32 %v2642_v24, %v740_v25  ;;  %v745_v30 = vmul.f32 %v2636_v40, %v722_v34  ;;  %v723_v41 = vmul.f32 %v1881_v61, %v2476_v58  ;;  %v1382_v57 = vmul.f32 0.015625, %v1351_v43 }
 0x330   :  { %1894 = vrsqrt.f32 %v1400_v12  ;;  %v1401_v38 = vadd.f32 1e-05, %v1385_v55 }
 0x331   :  { %v1353_v7 = vpop.xlane.xlu1 %1352  ;;  %v1883_v19 = vpop.eup %1882  ;;  %779 = vst [vmem:[#allocation8 + $0x28] sm:$0xff] %v763_v16  ;;  %v768_v20 = vadd.f32 %v2642_v24, %v745_v30  ;;  %v746_v13 = vmul.f32 %v2636_v40, %v723_v41  ;;  %v1398_v22 = vadd.f32 1e-05, %v1382_v57 }
 0x332   :  { %v1383_v27 = vmul.f32 0.015625, %v1353_v7  ;;  %v1885_v26 = vpop.eup %1884  ;;  %v720_v52 = vmul.f32 %v1883_v19, %v2483_v32  ;;  %1896 = vrsqrt.f32 %v1401_v38  ;;  %v1363_v15 = vpop.xlane.xlu0 %1362 }
 0x333   :  { %784 = vst [vmem:[#allocation8 + $0x50] sm:$0xff] %v768_v20  ;;  %v769_v58 = vadd.f32 %v2642_v24, %v746_v13  ;;  %v721_v29 = vmul.f32 %v1885_v26, %v2490_v18  ;;  %1898 = vrsqrt.f32 %v1398_v22  ;;  %v1388_v0 = vmul.f32 0.015625, %v1363_v15 }
 0x334   :  { %v1399_v28 = vadd.f32 1e-05, %v1383_v27  ;;  %v1887_v17 = vpop.eup %1886  ;;  %v743_v36 = vmul.f32 %v2636_v40, %v720_v52 }
 0x335   :  { %v1365_v4 = vpop.xlane.xlu1 %1364  ;;  %785 = vst [vmem:[#allocation8 + $0x58] sm:$0xff] %v769_v58  ;;  %v744_v8 = vmul.f32 %v2636_v40, %v721_v29  ;;  %v726_v9 = vmul.f32 %v1887_v17, %v2497_v47  ;;  %v1404_v3 = vadd.f32 1e-05, %v1388_v0 }
 0x336   :  { %1900 = vrsqrt.f32 %v1399_v28  ;;  %v1389_v32 = vmul.f32 0.015625, %v1365_v4  ;;  %v766_v10 = vadd.f32 %v2642_v24, %v743_v36  ;;  %v1359_v51 = vpop.xlane.xlu0 %1358 }
 0x337   :  { %v1889_v5 = vpop.eup %1888  ;;  %v767_v18 = vadd.f32 %v2642_v24, %v744_v8  ;;  %v749_v56 = vmul.f32 %v2636_v40, %v726_v9  ;;  %v1386_v49 = vmul.f32 0.015625, %v1359_v51  ;;  %1902 = vrsqrt.f32 %v1404_v3 }
 0x338   :  { %v1405_v46 = vadd.f32 1e-05, %v1389_v32  ;;  %782 = vst [vmem:[#allocation8 + $0x40] sm:$0xff] %v766_v10  ;;  %v727_v6 = vmul.f32 %v1889_v5, %v2504_v39 }
 0x339   :  { %v1361_v21 = vpop.xlane.xlu1 %1360  ;;  %v1891_v59 = vpop.eup %1890  ;;  %783 = vst [vmem:[#allocation8 + $0x48] sm:$0xff] %v767_v18  ;;  %v772_v47 = vadd.f32 %v2642_v24, %v749_v56  ;;  %v1402_v60 = vadd.f32 1e-05, %v1386_v49 }
 0x33a   :  { %1904 = vrsqrt.f32 %v1405_v46  ;;  %v1387_v25 = vmul.f32 0.015625, %v1361_v21  ;;  %v1893_v34 = vpop.eup %1892  ;;  %v750_v61 = vmul.f32 %v2636_v40, %v727_v6  ;;  %v724_v12 = vmul.f32 %v1891_v59, %v2511_v42  ;;  %v1371_v55 = vpop.xlane.xlu0 %1370 }
 0x33b   :  { %788 = vst [vmem:[#allocation8 + $0x70] sm:$0xff] %v772_v47  ;;  %v725_v43 = vmul.f32 %v1893_v34, %v2518_v23  ;;  %1906 = vrsqrt.f32 %v1402_v60  ;;  %v1392_v16 = vmul.f32 0.015625, %v1371_v55 }
 0x33c   :  { %v1403_v39 = vadd.f32 1e-05, %v1387_v25  ;;  %v773_v30 = vadd.f32 %v2642_v24, %v750_v61  ;;  %v747_v41 = vmul.f32 %v2636_v40, %v724_v12 }
 0x33d   :  { %v1373_v57 = vpop.xlane.xlu1 %1372  ;;  %v1895_v38 = vpop.eup %1894  ;;  %v748_v7 = vmul.f32 %v2636_v40, %v725_v43  ;;  %v1408_v19 = vadd.f32 1e-05, %v1392_v16 }
 0x33e   :  { %1908 = vrsqrt.f32 %v1403_v39  ;;  %v1393_v20 = vmul.f32 0.015625, %v1373_v57  ;;  %789 = vst [vmem:[#allocation8 + $0x78] sm:$0xff] %v773_v30  ;;  %v770_v42 = vadd.f32 %v2642_v24, %v747_v41  ;;  %v1432_v13 = vmul.f32 %v1895_v38, %v2525_v48  ;;  %v1367_v23 = vpop.xlane.xlu0 %1366 }
 0x33f   :  { %v1897_v22 = vpop.eup %1896  ;;  %v771_v27 = vadd.f32 %v2642_v24, %v748_v7  ;;  %1910 = vrsqrt.f32 %v1408_v19  ;;  %v1390_v52 = vmul.f32 0.015625, %v1367_v23 }
 0x340   :  { %v1409_v26 = vadd.f32 1e-05, %v1393_v20  ;;  %v1899_v15 = vpop.eup %1898  ;;  %786 = vst [vmem:[#allocation8 + $0x60] sm:$0xff] %v770_v42  ;;  %v1455_v58 = vmul.f32 %v2636_v40, %v1432_v13  ;;  %v1433_v29 = vmul.f32 %v1897_v22, %v2532_v50 }
 0x341   :  { %v1369_v28 = vpop.xlane.xlu1 %1368  ;;  %787 = vst [vmem:[#allocation8 + $0x68] sm:$0xff] %v771_v27  ;;  %v1430_v17 = vmul.f32 %v1899_v15, %v2539_v53  ;;  %v1406_v36 = vadd.f32 1e-05, %v1390_v52 }
 0x342   :  { %1912 = vrsqrt.f32 %v1409_v26  ;;  %v1391_v48 = vmul.f32 0.015625, %v1369_v28  ;;  %v1478_v4 = vadd.f32 %v2642_v24, %v1455_v58  ;;  %v1456_v8 = vmul.f32 %v2636_v40, %v1433_v29 }
 0x343   :  { %v1901_v0 = vpop.eup %1900  ;;  %v1375_v9 = vpop.xlane.xlu0 %1374  ;;  %v1453_v32 = vmul.f32 %v2636_v40, %v1430_v17  ;;  %1914 = vrsqrt.f32 %v1406_v36 }
 0x344   :  { %v1431_v10 = vmul.f32 %v1901_v0, %v2546_v35  ;;  %v1407_v3 = vadd.f32 1e-05, %v1391_v48  ;;  %1494 = vst [vmem:[#allocation8 + $0x90] sm:$0xff] %v1478_v4  ;;  %v1479_v50 = vadd.f32 %v2642_v24, %v1456_v8  ;;  %v1394_v51 = vmul.f32 0.015625, %v1375_v9  ;;  %v1903_v53 = vpop.eup %1902 }
 0x345   :  { %v1476_v5 = vadd.f32 %v2642_v24, %v1453_v32  ;;  %v1436_v46 = vmul.f32 %v1903_v53, %v2553_v63 }
 0x346   :  { %v1454_v18 = vmul.f32 %v2636_v40, %v1431_v10  ;;  %1916 = vrsqrt.f32 %v1407_v3  ;;  %1495 = vst [vmem:[#allocation8 + $0x98] sm:$0xff] %v1479_v50  ;;  %v1410_v49 = vadd.f32 1e-05, %v1394_v51 }
 0x347   :  { %v1905_v56 = vpop.eup %1904  ;;  %v1377_v6 = vpop.xlane.xlu1 %1376  ;;  %1492 = vst [vmem:[#allocation8 + $0x80] sm:$0xff] %v1476_v5  ;;  %v1459_v34 = vmul.f32 %v2636_v40, %v1436_v46 }
 0x348   :  { %v1379_v21 = vpop.xlane.xlu0 %1378  ;;  %v1477_v35 = vadd.f32 %v2642_v24, %v1454_v18  ;;  %v1437_v59 = vmul.f32 %v1905_v56, %v2560_v1  ;;  %v1395_v47 = vmul.f32 0.015625, %v1377_v6  ;;  %v1907_v25 = vpop.eup %1906  ;;  %1918 = vrsqrt.f32 %v1410_v49 }
 0x349   :  { %v1396_v60 = vmul.f32 0.015625, %v1379_v21  ;;  %v1434_v12 = vmul.f32 %v1907_v25, %v2567_v2  ;;  %v1482_v39 = vadd.f32 %v2642_v24, %v1459_v34 }
 0x34a   :  { %1493 = vst [vmem:[#allocation8 + $0x88] sm:$0xff] %v1477_v35  ;;  %v1460_v61 = vmul.f32 %v2636_v40, %v1437_v59  ;;  %v1411_v63 = vadd.f32 1e-05, %v1395_v47 }
 0x34b   :  { %v1412_v55 = vadd.f32 1e-05, %v1396_v60  ;;  %v1909_v43 = vpop.eup %1908  ;;  %v1381_v16 = vpop.xlane.xlu1 %1380  ;;  %v1457_v1 = vmul.f32 %v2636_v40, %v1434_v12  ;;  %1498 = vst [vmem:[#allocation8 + $0xb0] sm:$0xff] %v1482_v39 }
 0x34c   :  { %v1483_v30 = vadd.f32 %v2642_v24, %v1460_v61  ;;  %v1435_v41 = vmul.f32 %v1909_v43, %v2574_v54  ;;  %1920 = vrsqrt.f32 %v1411_v63  ;;  %v1911_v57 = vpop.eup %1910  ;;  %v1397_v38 = vmul.f32 0.015625, %v1381_v16 }
 0x34d   :  { %1922 = vrsqrt.f32 %v1412_v55  ;;  %v1480_v2 = vadd.f32 %v2642_v24, %v1457_v1  ;;  %v1440_v19 = vmul.f32 %v1911_v57, %v2581_v11 }
 0x34e   :  { %1499 = vst [vmem:[#allocation8 + $0xb8] sm:$0xff] %v1483_v30  ;;  %v1458_v7 = vmul.f32 %v2636_v40, %v1435_v41  ;;  %v1413_v42 = vadd.f32 1e-05, %v1397_v38 }
 0x34f   :  { %v1913_v20 = vpop.eup %1912  ;;  %1496 = vst [vmem:[#allocation8 + $0xa0] sm:$0xff] %v1480_v2  ;;  %v1463_v23 = vmul.f32 %v2636_v40, %v1440_v19 }
 0x350   :  { %v1481_v13 = vadd.f32 %v2642_v24, %v1458_v7  ;;  %v1441_v54 = vmul.f32 %v1913_v20, %v2588_v14  ;;  %v1915_v22 = vpop.eup %1914  ;;  %1924 = vrsqrt.f32 %v1413_v42 }
 0x351   :  { %v1486_v27 = vadd.f32 %v2642_v24, %v1463_v23  ;;  %v1438_v52 = vmul.f32 %v1915_v22, %v2595_v31 }
 0x352   :  { %1497 = vst [vmem:[#allocation8 + $0xa8] sm:$0xff] %v1481_v13  ;;  %v1464_v26 = vmul.f32 %v2636_v40, %v1441_v54 }
 0x353   :  { %v1917_v15 = vpop.eup %1916  ;;  %1502 = vst [vmem:[#allocation8 + $0xd0] sm:$0xff] %v1486_v27  ;;  %v1461_v58 = vmul.f32 %v2636_v40, %v1438_v52 }
 0x354   :  { %v1487_v11 = vadd.f32 %v2642_v24, %v1464_v26  ;;  %v1439_v29 = vmul.f32 %v1917_v15, %v2602_v45 }
 0x355   :  { %v1919_v28 = vpop.eup %1918  ;;  %v1484_v14 = vadd.f32 %v2642_v24, %v1461_v58 }
 0x356   :  { %1503 = vst [vmem:[#allocation8 + $0xd8] sm:$0xff] %v1487_v11  ;;  %v1462_v17 = vmul.f32 %v2636_v40, %v1439_v29  ;;  %v1442_v36 = vmul.f32 %v1919_v28, %v2608_v37 }
 0x357   :  { %1500 = vst [vmem:[#allocation8 + $0xc0] sm:$0xff] %v1484_v14 }
 0x358   :  { %v1485_v48 = vadd.f32 %v2642_v24, %v1462_v17  ;;  %v1465_v0 = vmul.f32 %v2636_v40, %v1442_v36 }
 0x359   :  { %v1921_v31 = vpop.eup %1920 }
 0x35a   :  { %v1923_v4 = vpop.eup %1922  ;;  %1501 = vst [vmem:[#allocation8 + $0xc8] sm:$0xff] %v1485_v48  ;;  %v1443_v8 = vmul.f32 %v1921_v31, %v2616_v44  ;;  %v1488_v45 = vadd.f32 %v2642_v24, %v1465_v0 }
 0x35b   :  { %v1444_v9 = vmul.f32 %v1923_v4, %v2620_v62 }
 0x35c   :  { %v1466_v32 = vmul.f32 %v2636_v40, %v1443_v8  ;;  %1504 = vst [vmem:[#allocation8 + $0xe0] sm:$0xff] %v1488_v45 }
 0x35d   :  { %v1467_v10 = vmul.f32 %v2636_v40, %v1444_v9  ;;  %v1925_v37 = vpop.eup %1924 }
 0x35e   :  { %v1489_v3 = vadd.f32 %v2642_v24, %v1466_v32  ;;  %v1445_v51 = vmul.f32 %v1925_v37, %v2629_v33 }
 0x35f   :  { %v1490_v50 = vadd.f32 %v2642_v24, %v1467_v10 }
 0x360   :  { %1505 = vst [vmem:[#allocation8 + $0xe8] sm:$0xff] %v1489_v3  ;;  %v1468_v44 = vmul.f32 %v2636_v40, %v1445_v51 }
 0x361   :  { %1506 = vst [vmem:[#allocation8 + $0xf0] sm:$0xff] %v1490_v50 }
 0x362   :  { %v1491_v62 = vadd.f32 %v2642_v24, %v1468_v44 }
 0x364   :  { %1507 = vst [vmem:[#allocation8 + $0xf8] sm:$0xff] %v1491_v62 }
 0x365   :  { %1997 = shalt.err (!%p1994_p5)
}
 0x366   :  { %1519 = dma.vmem_to_hbm [thread:$0]  %s1514_s6, 4096, %s2752_s7, [#allocation4], %s2016_s11, %s2016_s11, %s2017_s12  }
 0x367   :  { %2010 = dma.done.wait [#allocation4], 4096  }
 0x368   :  { %2011 = vsyncadd [#allocation4], 4294963200 }
 0x369   :  { %1523 = vsyncpa [#allocation3], 1 }
 0x36a   :  { %1524 = vsyncpa [#allocation6], 1 }
 0x36b   :  { %1525 = vsyncpa [#allocation4], 1 }

</bundles_post_ra>
